<compile_context>
chip_gen: v7x
topology: tpu7x:2x2x1
jax: 0.10.0
libtpu: 0.0.40
codegen_flags: <defaults>
</compile_context>

<pallas_src>
import functools

import jax
import jax.numpy as jnp
from jax.experimental import pallas as pl
from jax.experimental.pallas import tpu as pltpu


def vae_forward_kernel(
    # batch-tiled activations
    x_ref, aux_ref,
    # encoder params (weights bf16, biases f32)
    ew0_ref, ew_hid_ref, ew3_ref, eb_hid_ref, eb3_ref,
    # decoder params (weights bf16, biases f32)
    dw0_ref, dw_hid_ref, dw3_ref, db_hid_ref, db3_ref,
    # outputs
    img_ref, mulv_ref,
    *, latent_size,
):
    def dot(a, w):
        # bf16 MXU matmul with f32 accumulation.
        return jnp.dot(a.astype(w.dtype), w, preferred_element_type=jnp.float32)

    eb = eb_hid_ref[...]          # (3, He) f32; eb[k:k+1] broadcasts over rows
    db = db_hid_ref[...]          # (3, Hd) f32

    # -------- encoder: 3x (Linear + ReLU), then ONE fused Linear -> [mu | log_var] --------
    h = jnp.maximum(dot(x_ref[...], ew0_ref[...]) + eb[0:1], 0.0)
    h = jnp.maximum(dot(h, ew_hid_ref[0]) + eb[1:2], 0.0)
    h = jnp.maximum(dot(h, ew_hid_ref[1]) + eb[2:3], 0.0)
    enc = dot(h, ew3_ref[...]) + eb3_ref[...]        # (tile_b, 2*latent), lane-dense output
    mu = enc[:, :latent_size]
    log_var = enc[:, latent_size:]

    # -------- reparameterize (f32): z = mu + eps * exp(0.5 * log_var) --------
    eps = aux_ref[:, :latent_size]
    cid = aux_ref[:, latent_size:]
    z = mu + eps * jnp.exp(0.5 * log_var)

    # -------- decoder: [z | class_id] @ dw0  ==  z @ dw0[:L] + class_id @ dw0[L:] --------
    # (no in-kernel lane concat; the K=16 one-hot matmul stays a tiny MXU dot.)
    d = dot(z, dw0_ref[:latent_size, :]) + dot(cid, dw0_ref[latent_size:, :]) + db[0:1]
    d = jnp.maximum(d, 0.0)
    d = jnp.maximum(dot(d, dw_hid_ref[0]) + db[1:2], 0.0)
    d = jnp.maximum(dot(d, dw_hid_ref[1]) + db[2:3], 0.0)
    img = jnp.tanh(dot(d, dw3_ref[...]) + db3_ref[...])

    img_ref[...] = img.astype(img_ref.dtype)
    mulv_ref[...] = enc.astype(mulv_ref.dtype)


# Fixed argument order for the kernel's weight refs.
_WEIGHT_ORDER = ("ew0", "ew_hid", "ew3", "eb_hid", "eb3",
                 "dw0", "dw_hid", "dw3", "db_hid", "db3")
_MM_WEIGHTS = ("ew0", "ew_hid", "ew3", "dw0", "dw_hid", "dw3")


def prepare_params(params):
    """Cast matmul weights to bf16 and pack same-shaped params into single DMA streams."""
    bf = jnp.bfloat16
    return dict(
        ew0=params["ew0"].astype(bf),                                  # (output, He)
        ew_hid=jnp.stack([params["ew1"], params["ew2"]]).astype(bf),   # (2, He, He)
        ew3=params["ew3"].astype(bf),                                  # (He, 2*latent)
        eb_hid=jnp.concatenate(
            [params["eb0"], params["eb1"], params["eb2"]], axis=0),    # (3, He)
        eb3=params["eb3"],                                             # (1, 2*latent)
        dw0=params["dw0"].astype(bf),                                  # (latent+input, Hd)
        dw_hid=jnp.stack([params["dw1"], params["dw2"]]).astype(bf),   # (2, Hd, Hd)
        dw3=params["dw3"].astype(bf),                                  # (Hd, output)
        db_hid=jnp.concatenate(
            [params["db0"], params["db1"], params["db2"]], axis=0),    # (3, Hd)
        db3=params["db3"],                                             # (1, output)
    )


def _pick_tiling(batch, max_tile):
    """Return (tile_b, padded_batch).

    Largest sublane-aligned (multiple-of-8) tile <= max_tile that divides the batch
    (so no wrapper-side pad copy) while keeping >= 2 grid steps (v7x megacore)."""
    if batch <= 16:
        return batch, batch                           # single full-batch tile
    target = max(8, (min(max_tile, batch // 2) // 8) * 8)
    for t in range(target, 7, -8):
        if batch % t == 0:
            return t, batch                           # no padding needed
    # Rare fallback (no aligned divisor, e.g. odd batch): pad up to a tile multiple.
    return target, -(-batch // target) * target


@functools.partial(jax.jit, static_argnames=("latent_size", "max_tile_b", "img_dtype"))
def vae_forward(x, class_id, eps, kparams, *, latent_size,
                max_tile_b=1024, img_dtype=jnp.bfloat16):
    """VAE_Model.forward.  kparams = prepare_params(raw_params).
    Returns (constructed_image, mu, log_var)."""
    B, output_size = x.shape
    input_size = class_id.shape[1]

    # Single auxiliary stream carrying [eps | class_id]  (one DMA descriptor, not two).
    aux = jnp.concatenate([eps, class_id], axis=1)     # (B, latent+input)

    tile_b, b_pad = _pick_tiling(B, max_tile_b)
    num_tiles = b_pad // tile_b
    if b_pad != B:                                     # rare path only
        x = jnp.pad(x, ((0, b_pad - B), (0, 0)))
        aux = jnp.pad(aux, ((0, b_pad - B), (0, 0)))

    weights = [kparams[k] for k in _WEIGHT_ORDER]

    def batch_spec(feat):
        return pl.BlockSpec((tile_b, feat), lambda i: (i, 0))

    def const_spec(shape):
        # Full-array block + constant index_map -> VMEM-resident across all grid steps.
        n = len(shape)
        return pl.BlockSpec(tuple(shape), lambda i: (0,) * n)

    in_specs = ([batch_spec(output_size), batch_spec(latent_size + input_size)]
                + [const_spec(w.shape) for w in weights])
    out_specs = (batch_spec(output_size), batch_spec(2 * latent_size))
    out_shape = (
        jax.ShapeDtypeStruct((b_pad, output_size), img_dtype),        # constructed_image
        jax.ShapeDtypeStruct((b_pad, 2 * latent_size), jnp.float32),  # [mu | log_var]
    )

    # Advisory cost estimate for the XLA scheduler.
    mm_elems = sum(int(kparams[k].size) for k in _MM_WEIGHTS)
    weight_bytes = sum(int(kparams[k].size) * kparams[k].dtype.itemsize
                       for k in _WEIGHT_ORDER)
    act_bytes = b_pad * (4 * (output_size + latent_size + input_size + 2 * latent_size)
                         + jnp.dtype(img_dtype).itemsize * output_size)
    cost = pl.CostEstimate(
        flops=2 * b_pad * mm_elems,
        transcendentals=b_pad * (latent_size + output_size),   # exp + tanh
        bytes_accessed=weight_bytes + act_bytes,
    )

    img, mulv = pl.pallas_call(
        functools.partial(vae_forward_kernel, latent_size=latent_size),
        grid=(num_tiles,),
        in_specs=in_specs,
        out_specs=out_specs,
        out_shape=out_shape,
        compiler_params=pltpu.CompilerParams(
            dimension_semantics=("parallel",),
        ),
        cost_estimate=cost,
    )(x, aux, *weights)

    if b_pad != B:
        img, mulv = img[:B], mulv[:B]
    mu, log_var = mulv[:, :latent_size], mulv[:, latent_size:]
    return img, mu, log_var


def init_linear(key, fan_in, fan_out):
    """PyTorch nn.Linear default init: U(-1/sqrt(fan_in), 1/sqrt(fan_in)).
    Returns W as (fan_in, fan_out) (already transposed) and b as (1, fan_out)."""
    kw, kb = jax.random.split(key)
    bound = 1.0 / jnp.sqrt(fan_in)
    w = jax.random.uniform(kw, (fan_in, fan_out), jnp.float32, -bound, bound)
    b = jax.random.uniform(kb, (1, fan_out), jnp.float32, -bound, bound)
    return w, b


def reference_forward(x, class_id, eps, params, latent_size):
    """Plain-JAX reference with the same bf16-matmul / f32-accumulate recipe."""
    bf = jnp.bfloat16

    def lin(h, w, b):
        return jnp.dot(h.astype(bf), w.astype(bf),
                       preferred_element_type=jnp.float32) + b

    h = jax.nn.relu(lin(x, params["ew0"], params["eb0"]))
    h = jax.nn.relu(lin(h, params["ew1"], params["eb1"]))
    h = jax.nn.relu(lin(h, params["ew2"], params["eb2"]))
    enc = lin(h, params["ew3"], params["eb3"])
    mu, log_var = enc[:, :latent_size], enc[:, latent_size:]
    z = mu + eps * jnp.exp(0.5 * log_var)
    d = jnp.concatenate([z, class_id], axis=1)
    d = jax.nn.relu(lin(d, params["dw0"], params["db0"]))
    d = jax.nn.relu(lin(d, params["dw1"], params["db1"]))
    d = jax.nn.relu(lin(d, params["dw2"], params["db2"]))
    img = jnp.tanh(lin(d, params["dw3"], params["db3"]))
    return img, mu, log_var


if __name__ == "__main__":
    # Sizes consistent with the module's forward (x is the flattened image batch,
    # class_id is one-hot as in VAE_Model.train()).
    input_size = 16            # number of classes (one-hot width)
    encoder_hidden_size = 128
    latent_size = 32
    decoder_hidden_size = 128
    output_size = 256          # flattened image size
    batch = 256                # -> 2 grid steps of 128 rows (keeps both v7x TCs busy)

    key = jax.random.PRNGKey(0)
    keys = jax.random.split(key, 12)

    # Encoder: Linear(output, H) -> Linear(H, H) -> Linear(H, H) -> Linear(H, 2*latent)
    ew0, eb0 = init_linear(keys[0], output_size, encoder_hidden_size)
    ew1, eb1 = init_linear(keys[1], encoder_hidden_size, encoder_hidden_size)
    ew2, eb2 = init_linear(keys[2], encoder_hidden_size, encoder_hidden_size)
    ew3, eb3 = init_linear(keys[3], encoder_hidden_size, latent_size * 2)
    # Decoder: Linear(latent+input, H) -> Linear(H, H) -> Linear(H, H) -> Linear(H, output)
    dw0, db0 = init_linear(keys[4], latent_size + input_size, decoder_hidden_size)
    dw1, db1 = init_linear(keys[5], decoder_hidden_size, decoder_hidden_size)
    dw2, db2 = init_linear(keys[6], decoder_hidden_size, decoder_hidden_size)
    dw3, db3 = init_linear(keys[7], decoder_hidden_size, output_size)

    params = dict(
        ew0=ew0, eb0=eb0, ew1=ew1, eb1=eb1, ew2=ew2, eb2=eb2, ew3=ew3, eb3=eb3,
        dw0=dw0, db0=db0, dw1=dw1, db1=db1, dw2=dw2, db2=db2, dw3=dw3, db3=db3,
    )
    kparams = prepare_params(params)

    # Inputs: x is the flattened image batch; class_id is one-hot (as in train()).
    x = jax.random.normal(keys[8], (batch, output_size), jnp.float32)
    class_labels = jax.random.randint(keys[9], (batch,), 0, input_size)
    class_id = jnp.eye(input_size, dtype=jnp.float32)[class_labels]
    # Deterministic reparameterization noise (torch.randn_like equivalent).
    eps = jax.random.normal(keys[10], (batch, latent_size), jnp.float32)

    img, mu, log_var = jax.block_until_ready(
        vae_forward(x, class_id, eps, kparams, latent_size=latent_size)
    )

    # Validate against the plain-JAX reference (same bf16 matmul recipe).
    img_ref, mu_ref, logvar_ref = reference_forward(x, class_id, eps, params, latent_size)
    assert img.shape == (batch, output_size) and img.dtype == jnp.bfloat16
    assert mu.shape == (batch, latent_size)
    assert log_var.shape == (batch, latent_size)
    assert jnp.allclose(mu, mu_ref, atol=1e-2, rtol=1e-2)
    assert jnp.allclose(log_var, logvar_ref, atol=1e-2, rtol=1e-2)
    assert jnp.allclose(img.astype(jnp.float32), img_ref, atol=2e-2, rtol=2e-2)

    print("KERNEL_OK")
</pallas_src>

<mosaic_0001>
module attributes {stable_mosaic.version = 11 : i64} {
  func.func @vae_forward_kernel(%arg0: i32, %arg1: memref<128x256xf32, #tpu.memory_space<vmem>>, %arg2: memref<128x48xf32, #tpu.memory_space<vmem>>, %arg3: memref<256x128xbf16, #tpu.memory_space<vmem>>, %arg4: memref<2x128x128xbf16, #tpu.memory_space<vmem>>, %arg5: memref<128x64xbf16, #tpu.memory_space<vmem>>, %arg6: memref<3x128xf32, #tpu.memory_space<vmem>>, %arg7: memref<1x64xf32, #tpu.memory_space<vmem>>, %arg8: memref<48x128xbf16, #tpu.memory_space<vmem>>, %arg9: memref<2x128x128xbf16, #tpu.memory_space<vmem>>, %arg10: memref<128x256xbf16, #tpu.memory_space<vmem>>, %arg11: memref<3x128xf32, #tpu.memory_space<vmem>>, %arg12: memref<1x256xf32, #tpu.memory_space<vmem>>, %arg13: memref<128x256xbf16, #tpu.memory_space<vmem>>, %arg14: memref<128x64xf32, #tpu.memory_space<vmem>>) attributes {dimension_semantics = [#tpu.dimension_semantics<parallel>], iteration_bounds = array<i64: 2>, scalar_prefetch = 0 : i64, scratch_operands = 0 : i64, tpu.core_type = #tpu.core_type<tc>, window_params = [{transform_indices = @transform_0, window_bounds = array<i64: 128, 256>}, {transform_indices = @transform_1, window_bounds = array<i64: 128, 48>}, {pipeline_mode = #tpu.pipeline_mode<synchronous>, transform_indices = @transform_2, window_bounds = array<i64: 256, 128>}, {pipeline_mode = #tpu.pipeline_mode<synchronous>, transform_indices = @transform_3, window_bounds = array<i64: 2, 128, 128>}, {pipeline_mode = #tpu.pipeline_mode<synchronous>, transform_indices = @transform_4, window_bounds = array<i64: 128, 64>}, {pipeline_mode = #tpu.pipeline_mode<synchronous>, transform_indices = @transform_5, window_bounds = array<i64: 3, 128>}, {pipeline_mode = #tpu.pipeline_mode<synchronous>, transform_indices = @transform_6, window_bounds = array<i64: 1, 64>}, {pipeline_mode = #tpu.pipeline_mode<synchronous>, transform_indices = @transform_7, window_bounds = array<i64: 48, 128>}, {pipeline_mode = #tpu.pipeline_mode<synchronous>, transform_indices = @transform_8, window_bounds = array<i64: 2, 128, 128>}, {pipeline_mode = #tpu.pipeline_mode<synchronous>, transform_indices = @transform_9, window_bounds = array<i64: 128, 256>}, {pipeline_mode = #tpu.pipeline_mode<synchronous>, transform_indices = @transform_10, window_bounds = array<i64: 3, 128>}, {pipeline_mode = #tpu.pipeline_mode<synchronous>, transform_indices = @transform_11, window_bounds = array<i64: 1, 256>}, {transform_indices = @transform_12, window_bounds = array<i64: 128, 256>}, {transform_indices = @transform_13, window_bounds = array<i64: 128, 64>}]} {
    %c0 = arith.constant 0 : index
    %c0_0 = arith.constant 0 : index
    %0 = vector.load %arg6[%c0, %c0_0] : memref<3x128xf32, #tpu.memory_space<vmem>>, vector<3x128xf32>
    %c0_1 = arith.constant 0 : index
    %c0_2 = arith.constant 0 : index
    %1 = vector.load %arg11[%c0_1, %c0_2] : memref<3x128xf32, #tpu.memory_space<vmem>>, vector<3x128xf32>
    %c0_3 = arith.constant 0 : index
    %c0_4 = arith.constant 0 : index
    %2 = vector.load %arg1[%c0_3, %c0_4] : memref<128x256xf32, #tpu.memory_space<vmem>>, vector<128x256xf32>
    %c0_5 = arith.constant 0 : index
    %c0_6 = arith.constant 0 : index
    %3 = vector.load %arg3[%c0_5, %c0_6] : memref<256x128xbf16, #tpu.memory_space<vmem>>, vector<256x128xbf16>
    %4 = arith.truncf %2 : vector<128x256xf32> to vector<128x256xbf16>
    %cst = arith.constant dense<0.000000e+00> : vector<128x128xf32>
    %5 = tpu.matmul %4, %3, %cst {dimension_numbers = #tpu.dot_dimension_numbers<[1], [0], [0], [1], [0, 0, 1, 1], [], []>} : vector<128x256xbf16>, vector<256x128xbf16>, vector<128x128xf32> -> vector<128x128xf32>
    %6 = vector.extract_strided_slice %0 {offsets = [0, 0], sizes = [1, 128], strides = [1, 1]} : vector<3x128xf32> to vector<1x128xf32>
    %7 = vector.broadcast %6 : vector<1x128xf32> to vector<128x128xf32>
    %8 = arith.addf %5, %7 : vector<128x128xf32>
    %cst_7 = arith.constant 0.000000e+00 : f32
    %9 = vector.broadcast %cst_7 : f32 to vector<128x128xf32>
    %10 = arith.maximumf %8, %9 : vector<128x128xf32>
    %c0_8 = arith.constant 0 : index
    %c0_9 = arith.constant 0 : index
    %c0_10 = arith.constant 0 : index
    %11 = vector.load %arg4[%c0_8, %c0_9, %c0_10] : memref<2x128x128xbf16, #tpu.memory_space<vmem>>, vector<1x128x128xbf16>
    %12 = vector.shape_cast %11 : vector<1x128x128xbf16> to vector<128x128xbf16>
    %13 = arith.truncf %10 : vector<128x128xf32> to vector<128x128xbf16>
    %cst_11 = arith.constant dense<0.000000e+00> : vector<128x128xf32>
    %14 = tpu.matmul %13, %12, %cst_11 {dimension_numbers = #tpu.dot_dimension_numbers<[1], [0], [0], [1], [0, 0, 1, 1], [], []>} : vector<128x128xbf16>, vector<128x128xbf16>, vector<128x128xf32> -> vector<128x128xf32>
    %15 = vector.extract_strided_slice %0 {offsets = [1, 0], sizes = [1, 128], strides = [1, 1]} : vector<3x128xf32> to vector<1x128xf32>
    %16 = vector.broadcast %15 : vector<1x128xf32> to vector<128x128xf32>
    %17 = arith.addf %14, %16 : vector<128x128xf32>
    %cst_12 = arith.constant 0.000000e+00 : f32
    %18 = vector.broadcast %cst_12 : f32 to vector<128x128xf32>
    %19 = arith.maximumf %17, %18 : vector<128x128xf32>
    %c1 = arith.constant 1 : index
    %c0_13 = arith.constant 0 : index
    %c0_14 = arith.constant 0 : index
    %20 = vector.load %arg4[%c1, %c0_13, %c0_14] : memref<2x128x128xbf16, #tpu.memory_space<vmem>>, vector<1x128x128xbf16>
    %21 = vector.shape_cast %20 : vector<1x128x128xbf16> to vector<128x128xbf16>
    %22 = arith.truncf %19 : vector<128x128xf32> to vector<128x128xbf16>
    %cst_15 = arith.constant dense<0.000000e+00> : vector<128x128xf32>
    %23 = tpu.matmul %22, %21, %cst_15 {dimension_numbers = #tpu.dot_dimension_numbers<[1], [0], [0], [1], [0, 0, 1, 1], [], []>} : vector<128x128xbf16>, vector<128x128xbf16>, vector<128x128xf32> -> vector<128x128xf32>
    %24 = vector.extract_strided_slice %0 {offsets = [2, 0], sizes = [1, 128], strides = [1, 1]} : vector<3x128xf32> to vector<1x128xf32>
    %25 = vector.broadcast %24 : vector<1x128xf32> to vector<128x128xf32>
    %26 = arith.addf %23, %25 : vector<128x128xf32>
    %cst_16 = arith.constant 0.000000e+00 : f32
    %27 = vector.broadcast %cst_16 : f32 to vector<128x128xf32>
    %28 = arith.maximumf %26, %27 : vector<128x128xf32>
    %c0_17 = arith.constant 0 : index
    %c0_18 = arith.constant 0 : index
    %29 = vector.load %arg5[%c0_17, %c0_18] : memref<128x64xbf16, #tpu.memory_space<vmem>>, vector<128x64xbf16>
    %30 = arith.truncf %28 : vector<128x128xf32> to vector<128x128xbf16>
    %cst_19 = arith.constant dense<0.000000e+00> : vector<128x64xf32>
    %31 = tpu.matmul %30, %29, %cst_19 {dimension_numbers = #tpu.dot_dimension_numbers<[1], [0], [0], [1], [0, 0, 1, 1], [], []>} : vector<128x128xbf16>, vector<128x64xbf16>, vector<128x64xf32> -> vector<128x64xf32>
    %c0_20 = arith.constant 0 : index
    %c0_21 = arith.constant 0 : index
    %32 = vector.load %arg7[%c0_20, %c0_21] : memref<1x64xf32, #tpu.memory_space<vmem>>, vector<1x64xf32>
    %33 = vector.broadcast %32 : vector<1x64xf32> to vector<128x64xf32>
    %34 = arith.addf %31, %33 : vector<128x64xf32>
    %35 = vector.extract_strided_slice %34 {offsets = [0, 0], sizes = [128, 32], strides = [1, 1]} : vector<128x64xf32> to vector<128x32xf32>
    %36 = vector.extract_strided_slice %34 {offsets = [0, 32], sizes = [128, 32], strides = [1, 1]} : vector<128x64xf32> to vector<128x32xf32>
    %c0_22 = arith.constant 0 : index
    %c0_23 = arith.constant 0 : index
    %37 = vector.load %arg2[%c0_22, %c0_23] : memref<128x48xf32, #tpu.memory_space<vmem>>, vector<128x32xf32>
    %c0_24 = arith.constant 0 : index
    %c32 = arith.constant 32 : index
    %38 = vector.load %arg2[%c0_24, %c32] : memref<128x48xf32, #tpu.memory_space<vmem>>, vector<128x16xf32>
    %cst_25 = arith.constant 5.000000e-01 : f32
    %39 = vector.broadcast %cst_25 : f32 to vector<128x32xf32>
    %40 = arith.mulf %39, %36 : vector<128x32xf32>
    %41 = math.exp %40 : vector<128x32xf32>
    %42 = arith.mulf %37, %41 : vector<128x32xf32>
    %43 = arith.addf %35, %42 : vector<128x32xf32>
    %c0_26 = arith.constant 0 : index
    %c0_27 = arith.constant 0 : index
    %44 = vector.load %arg8[%c0_26, %c0_27] : memref<48x128xbf16, #tpu.memory_space<vmem>>, vector<32x128xbf16>
    %45 = arith.truncf %43 : vector<128x32xf32> to vector<128x32xbf16>
    %cst_28 = arith.constant dense<0.000000e+00> : vector<128x128xf32>
    %46 = tpu.matmul %45, %44, %cst_28 {dimension_numbers = #tpu.dot_dimension_numbers<[1], [0], [0], [1], [0, 0, 1, 1], [], []>} : vector<128x32xbf16>, vector<32x128xbf16>, vector<128x128xf32> -> vector<128x128xf32>
    %c32_29 = arith.constant 32 : index
    %c0_30 = arith.constant 0 : index
    %47 = vector.load %arg8[%c32_29, %c0_30] : memref<48x128xbf16, #tpu.memory_space<vmem>>, vector<16x128xbf16>
    %48 = arith.truncf %38 : vector<128x16xf32> to vector<128x16xbf16>
    %cst_31 = arith.constant dense<0.000000e+00> : vector<128x128xf32>
    %49 = tpu.matmul %48, %47, %cst_31 {dimension_numbers = #tpu.dot_dimension_numbers<[1], [0], [0], [1], [0, 0, 1, 1], [], []>} : vector<128x16xbf16>, vector<16x128xbf16>, vector<128x128xf32> -> vector<128x128xf32>
    %50 = arith.addf %46, %49 : vector<128x128xf32>
    %51 = vector.extract_strided_slice %1 {offsets = [0, 0], sizes = [1, 128], strides = [1, 1]} : vector<3x128xf32> to vector<1x128xf32>
    %52 = vector.broadcast %51 : vector<1x128xf32> to vector<128x128xf32>
    %53 = arith.addf %50, %52 : vector<128x128xf32>
    %cst_32 = arith.constant 0.000000e+00 : f32
    %54 = vector.broadcast %cst_32 : f32 to vector<128x128xf32>
    %55 = arith.maximumf %53, %54 : vector<128x128xf32>
    %c0_33 = arith.constant 0 : index
    %c0_34 = arith.constant 0 : index
    %c0_35 = arith.constant 0 : index
    %56 = vector.load %arg9[%c0_33, %c0_34, %c0_35] : memref<2x128x128xbf16, #tpu.memory_space<vmem>>, vector<1x128x128xbf16>
    %57 = vector.shape_cast %56 : vector<1x128x128xbf16> to vector<128x128xbf16>
    %58 = arith.truncf %55 : vector<128x128xf32> to vector<128x128xbf16>
    %cst_36 = arith.constant dense<0.000000e+00> : vector<128x128xf32>
    %59 = tpu.matmul %58, %57, %cst_36 {dimension_numbers = #tpu.dot_dimension_numbers<[1], [0], [0], [1], [0, 0, 1, 1], [], []>} : vector<128x128xbf16>, vector<128x128xbf16>, vector<128x128xf32> -> vector<128x128xf32>
    %60 = vector.extract_strided_slice %1 {offsets = [1, 0], sizes = [1, 128], strides = [1, 1]} : vector<3x128xf32> to vector<1x128xf32>
    %61 = vector.broadcast %60 : vector<1x128xf32> to vector<128x128xf32>
    %62 = arith.addf %59, %61 : vector<128x128xf32>
    %cst_37 = arith.constant 0.000000e+00 : f32
    %63 = vector.broadcast %cst_37 : f32 to vector<128x128xf32>
    %64 = arith.maximumf %62, %63 : vector<128x128xf32>
    %c1_38 = arith.constant 1 : index
    %c0_39 = arith.constant 0 : index
    %c0_40 = arith.constant 0 : index
    %65 = vector.load %arg9[%c1_38, %c0_39, %c0_40] : memref<2x128x128xbf16, #tpu.memory_space<vmem>>, vector<1x128x128xbf16>
    %66 = vector.shape_cast %65 : vector<1x128x128xbf16> to vector<128x128xbf16>
    %67 = arith.truncf %64 : vector<128x128xf32> to vector<128x128xbf16>
    %cst_41 = arith.constant dense<0.000000e+00> : vector<128x128xf32>
    %68 = tpu.matmul %67, %66, %cst_41 {dimension_numbers = #tpu.dot_dimension_numbers<[1], [0], [0], [1], [0, 0, 1, 1], [], []>} : vector<128x128xbf16>, vector<128x128xbf16>, vector<128x128xf32> -> vector<128x128xf32>
    %69 = vector.extract_strided_slice %1 {offsets = [2, 0], sizes = [1, 128], strides = [1, 1]} : vector<3x128xf32> to vector<1x128xf32>
    %70 = vector.broadcast %69 : vector<1x128xf32> to vector<128x128xf32>
    %71 = arith.addf %68, %70 : vector<128x128xf32>
    %cst_42 = arith.constant 0.000000e+00 : f32
    %72 = vector.broadcast %cst_42 : f32 to vector<128x128xf32>
    %73 = arith.maximumf %71, %72 : vector<128x128xf32>
    %c0_43 = arith.constant 0 : index
    %c0_44 = arith.constant 0 : index
    %74 = vector.load %arg10[%c0_43, %c0_44] : memref<128x256xbf16, #tpu.memory_space<vmem>>, vector<128x256xbf16>
    %75 = arith.truncf %73 : vector<128x128xf32> to vector<128x128xbf16>
    %cst_45 = arith.constant dense<0.000000e+00> : vector<128x256xf32>
    %76 = tpu.matmul %75, %74, %cst_45 {dimension_numbers = #tpu.dot_dimension_numbers<[1], [0], [0], [1], [0, 0, 1, 1], [], []>} : vector<128x128xbf16>, vector<128x256xbf16>, vector<128x256xf32> -> vector<128x256xf32>
    %c0_46 = arith.constant 0 : index
    %c0_47 = arith.constant 0 : index
    %77 = vector.load %arg12[%c0_46, %c0_47] : memref<1x256xf32, #tpu.memory_space<vmem>>, vector<1x256xf32>
    %78 = vector.broadcast %77 : vector<1x256xf32> to vector<128x256xf32>
    %79 = arith.addf %76, %78 : vector<128x256xf32>
    %80 = math.tanh %79 : vector<128x256xf32>
    %81 = arith.truncf %80 : vector<128x256xf32> to vector<128x256xbf16>
    %c0_48 = arith.constant 0 : index
    %c0_49 = arith.constant 0 : index
    %82 = vector.load %arg13[%c0_48, %c0_49] : memref<128x256xbf16, #tpu.memory_space<vmem>>, vector<128x256xbf16>
    tpu.vector_store %arg13[%c0_48, %c0_49], %81 {strides = array<i32>} : memref<128x256xbf16, #tpu.memory_space<vmem>>, vector<128x256xbf16>,
    %c0_50 = arith.constant 0 : index
    %c0_51 = arith.constant 0 : index
    %83 = vector.load %arg14[%c0_50, %c0_51] : memref<128x64xf32, #tpu.memory_space<vmem>>, vector<128x64xf32>
    tpu.vector_store %arg14[%c0_50, %c0_51], %34 {strides = array<i32>} : memref<128x64xf32, #tpu.memory_space<vmem>>, vector<128x64xf32>,
    return
  }
  func.func @transform_0(%arg0: i32) -> (i32, i32) {
    %c0_i32 = arith.constant 0 : i32
    %c0_i32_0 = arith.constant 0 : i32
    return %arg0, %c0_i32 : i32, i32
  }
  func.func @transform_1(%arg0: i32) -> (i32, i32) {
    %c0_i32 = arith.constant 0 : i32
    %c0_i32_0 = arith.constant 0 : i32
    return %arg0, %c0_i32 : i32, i32
  }
  func.func @transform_2(%arg0: i32) -> (i32, i32) {
    %c0_i32 = arith.constant 0 : i32
    %c0_i32_0 = arith.constant 0 : i32
    %c0_i32_1 = arith.constant 0 : i32
    return %c0_i32, %c0_i32_0 : i32, i32
  }
  func.func @transform_3(%arg0: i32) -> (i32, i32, i32) {
    %c0_i32 = arith.constant 0 : i32
    %c0_i32_0 = arith.constant 0 : i32
    %c0_i32_1 = arith.constant 0 : i32
    %c0_i32_2 = arith.constant 0 : i32
    return %c0_i32, %c0_i32_0, %c0_i32_1 : i32, i32, i32
  }
  func.func @transform_4(%arg0: i32) -> (i32, i32) {
    %c0_i32 = arith.constant 0 : i32
    %c0_i32_0 = arith.constant 0 : i32
    %c0_i32_1 = arith.constant 0 : i32
    return %c0_i32, %c0_i32_0 : i32, i32
  }
  func.func @transform_5(%arg0: i32) -> (i32, i32) {
    %c0_i32 = arith.constant 0 : i32
    %c0_i32_0 = arith.constant 0 : i32
    %c0_i32_1 = arith.constant 0 : i32
    return %c0_i32, %c0_i32_0 : i32, i32
  }
  func.func @transform_6(%arg0: i32) -> (i32, i32) {
    %c0_i32 = arith.constant 0 : i32
    %c0_i32_0 = arith.constant 0 : i32
    %c0_i32_1 = arith.constant 0 : i32
    return %c0_i32, %c0_i32_0 : i32, i32
  }
  func.func @transform_7(%arg0: i32) -> (i32, i32) {
    %c0_i32 = arith.constant 0 : i32
    %c0_i32_0 = arith.constant 0 : i32
    %c0_i32_1 = arith.constant 0 : i32
    return %c0_i32, %c0_i32_0 : i32, i32
  }
  func.func @transform_8(%arg0: i32) -> (i32, i32, i32) {
    %c0_i32 = arith.constant 0 : i32
    %c0_i32_0 = arith.constant 0 : i32
    %c0_i32_1 = arith.constant 0 : i32
    %c0_i32_2 = arith.constant 0 : i32
    return %c0_i32, %c0_i32_0, %c0_i32_1 : i32, i32, i32
  }
  func.func @transform_9(%arg0: i32) -> (i32, i32) {
    %c0_i32 = arith.constant 0 : i32
    %c0_i32_0 = arith.constant 0 : i32
    %c0_i32_1 = arith.constant 0 : i32
    return %c0_i32, %c0_i32_0 : i32, i32
  }
  func.func @transform_10(%arg0: i32) -> (i32, i32) {
    %c0_i32 = arith.constant 0 : i32
    %c0_i32_0 = arith.constant 0 : i32
    %c0_i32_1 = arith.constant 0 : i32
    return %c0_i32, %c0_i32_0 : i32, i32
  }
  func.func @transform_11(%arg0: i32) -> (i32, i32) {
    %c0_i32 = arith.constant 0 : i32
    %c0_i32_0 = arith.constant 0 : i32
    %c0_i32_1 = arith.constant 0 : i32
    return %c0_i32, %c0_i32_0 : i32, i32
  }
  func.func @transform_12(%arg0: i32) -> (i32, i32) {
    %c0_i32 = arith.constant 0 : i32
    %c0_i32_0 = arith.constant 0 : i32
    return %arg0, %c0_i32 : i32, i32
  }
  func.func @transform_13(%arg0: i32) -> (i32, i32) {
    %c0_i32 = arith.constant 0 : i32
    %c0_i32_0 = arith.constant 0 : i32
    return %arg0, %c0_i32 : i32, i32
  }
}

</mosaic_0001>

<bundles_post_ra>
// kernel: vae_forward.1
= control target key start
LH: loop header
LB: loop body
LE: loop exit
PB: predicated region body
PF: predicated region fallthrough
CT: control target
= control target key end

     0   :  { %s4755_s0 = inlined_call_operand.vmem [shape: f32[256,256], index: 0, kind: input, shape index: {}]   ;;  %s4756_s1 = inlined_call_operand.vmem [shape: f32[256,48], index: 1, kind: input, shape index: {}]   ;;  %s4757_s2 = inlined_call_operand.vmem [shape: bf16[256,128], index: 2, kind: input, shape index: {}]   ;;  %s4758_s3 = inlined_call_operand.hbm [shape: bf16[2,128,128], index: 3, kind: input, shape index: {}]   ;;  %s4759_s4 = inlined_call_operand.vmem [shape: bf16[128,64], index: 4, kind: input, shape index: {}]   ;;  %s4760_s5 = inlined_call_operand.vmem [shape: f32[3,128], index: 5, kind: input, shape index: {}]   ;;  %s4761_s6 = inlined_call_operand.vmem [shape: f32[1,64], index: 6, kind: input, shape index: {}]   ;;  %s4762_s7 = inlined_call_operand.hbm [shape: bf16[48,128], index: 7, kind: input, shape index: {}]   ;;  %s4763_s8 = inlined_call_operand.hbm [shape: bf16[2,128,128], index: 8, kind: input, shape index: {}]   ;;  %s4764_s9 = inlined_call_operand.hbm [shape: bf16[128,256], index: 9, kind: input, shape index: {}]   ;;  %s4765_s10 = inlined_call_operand.vmem [shape: f32[3,128], index: 10, kind: input, shape index: {}]   ;;  %s4766_s11 = inlined_call_operand.hbm [shape: f32[1,256], index: 11, kind: input, shape index: {}]   ;;  %s4767_s12 = inlined_call_operand.hbm [shape: bf16[256,256], index: 12, kind: output, shape index: {0}]   ;;  %s4768_s13 = inlined_call_operand.vmem [shape: f32[256,64], index: 13, kind: output, shape index: {1}]  }
   0x1   :  { %4785 = sst [smem:[#allocation23_spill]] %s4762_s7 }
   0x2   :  { %4786 = sst [smem:[#allocation24_spill]] %s4767_s12 }
   0x3   :  { %19 = vsyncpa [#allocation3], 0 }
   0x4   :  { %20 = vsyncpa [#allocation6], 0 }
   0x5   :  { %21 = vsyncpa [#allocation9], 0 }
   0x6   :  { %22 = vsyncpa [#allocation4], 0 }
   0x7   :  { %24 = vsyncpa [#allocation4 + $0x1], 0  ;;  %s3974_s25 = smov 0   ;;  %s3976_s26 = smov 0  }
   0x8   :  { %s3978_s27 = smov 0   ;;  %s3980_s28 = smov 0  }
   0x9 LB: > { %4787 = sst [smem:[#allocation16_spill]] %s3876_s25  ;;  %s3995_s29 = sadd.s32 4294967295, %s3888_s28   ;;  %s3888_s28 = sphi %s3980_s28, %s4816_s28   ;;  %s3884_s27 = sphi %s3978_s27, %s4818_s27   ;;  %s3880_s26 = sphi %s3976_s26, %s4820_s26   ;;  %s3876_s25 = sphi %s3974_s25, %s4819_s25  }
   0xa   : > { %4788 = sst [smem:[#allocation17_spill]] %s3884_s27  ;;  %s2849_s30 = sadd.s32 4294967294, %s3888_s28  }
   0xb   : > { %4789 = sst [smem:[#allocation18_spill]] %s3888_s28  ;;  %s3999_s14 = sadd.s32 1, %s3888_s28  }
   0xc   : > { %4790 = sst [smem:[#allocation19_spill]] %s3999_s14  ;;  %s299_s15 = sadd.s32 1, %s3884_s27 }
   0xd   : > { %s296_s16 = ssub.s32 %s3888_s28, %s3999_s14  ;;  %p309_p0 = scmp.ne.s32.totalorder %s3884_s27, %s3880_s26 }
   0xe   : > { %p297_p1 = scmp.eq.s32.totalorder %s296_s16, 0  ;;  %p310_p2 = scmp.eq.s32.totalorder %s3995_s29, 1 }
   0xf   : > { %p315_p3 = scmp.ne.s32.totalorder %s3880_s26, %s3876_s25  ;;  %p316_p4 = scmp.eq.s32.totalorder %s2849_s30, 1 }
  0x10   : > { %s4010_s17 = scalar_select %p297_p1, %s3884_s27, %s299_s15  }
  0x11   : > { %p4012_p5 = por %p310_p2, %p309_p0  ;;  %p4016_p6 = por %p316_p4, %p315_p3 }
  0x12   : > { %4791 = sst [smem:[#allocation20_spill]] %s4010_s17  ;;  %p2850_p7 = scmp.ge.s32.totalorder %s3888_s28, 1 }
  0x13   : > { %s4792_s18 = scalar_select %p4012_p5, 1, 0 }
  0x14   : > { %s4794_s19 = scalar_select %p4016_p6, 1, 0 }
  0x15   : > { %4793 = sst [smem:[#allocation21_spill]] %s4792_s18  ;;  %p349_p8 = scmp.lt.s32.totalorder %s3888_s28, 3 }
  0x16   : > { %4795 = sst [smem:[#allocation22_spill]] %s4794_s19  ;;  %p4773_p9 = scmp.eq.s32.totalorder %s3995_s29, 0 }
  0x17   : > { %p4023_p10 = pnand %p2850_p7, %p349_p8  ;;  %s3890_s21 = smov [#allocation5]  }
  0x18   : > { %s386_s22 = sshll.u32 %s3890_s21, 4  ;;  %s3891_s24 = smov [#allocation8]   ;;  %s387_s22 = int_to_ptr.vmem [resolvable:$true] %s386_s22 }
  0x19   : > { %s4796_s20 = scalar_select %p4023_p10, 1, 0 }
  0x1a   : > { %p3419_p11 = pneg %p4023_p10  ;;  %s412_s30 = sshll.u32 %s3891_s24, 4  ;;  %s4035_s30 = int_to_ptr.vmem [resolvable:$true] %s412_s30 }
  0x1b   : > { %s4798_s7 = sld [smem:[#allocation23_spill]] }
  0x1c   : > { %p4031_p12 = pnand %p4773_p9, %p3419_p11 }
  0x1e   : > { %p4045_p0 = pneg %p4031_p12 }
  0x21   : > { %s3674_s17 = scalar_lea.hbm %s4798_s7, 384 }
  0x22   : > { %p3675_p13 = scmp.ne.s32.totalorder %s4798_s7, %s3674_s17  ;;  %p3681_p3 = scmp.lt.u32.totalorder %s3674_s17, %s4798_s7 }
  0x24   : > { %p3677_p1 = pnand %p4045_p0, %p3675_p13 }
  0x26   : > { %p3678_p2 = pneg %p3677_p1 }
  0x28   : > { %p3683_p4 = pnand %p3681_p3, %p3678_p2 }
  0x2a   : > { %3686 = shalt.err (!%p3683_p4)
}
  0x2b   : > { %s3687_s15 = scalar_lea.vmem %s387_s22, 384  ;;  %p3695_p9 = scmp.lt.s32.totalorder %s387_s22, %s387_s22 }
  0x2c   : > { %p3688_p7 = scmp.ne.s32.totalorder %s387_s22, %s3687_s15  ;;  %p3696_p6 = scmp.lt.s32.totalorder %s3687_s15, %s3687_s15 }
  0x2e   : > { %p3690_p8 = pnand %p3688_p7, %p4045_p0  ;;  %p3697_p5 = por %p3696_p6, %p3695_p9 }
  0x30   : > { %p3691_p11 = pneg %p3690_p8 }
  0x32   : > { %p3698_p10 = pnand %p3697_p5, %p3691_p11 }
  0x34   : > { %3701 = shalt.err (!%p3698_p10)
}
  0x35   : > { %s4781_s27 = smov 64   ;;  %s4783_s14 = smov 4  }
  0x36   : > { %3425 = dma.hbm_to_vmem [thread:$0]  (!%p4031_p12), %s4798_s7, 384, %s387_s22, [#allocation6], %s4781_s27, %s4781_s27, %s4783_s14  }
  0x37   : > { %s3702_s25 = scalar_lea.hbm %s4764_s9, 2048 }
  0x38   : > { %p3703_p5 = scmp.ne.s32.totalorder %s4764_s9, %s3702_s25  ;;  %p3709_p10 = scmp.lt.u32.totalorder %s3702_s25, %s4764_s9 }
  0x3a   : > { %p3705_p6 = pnand %p3703_p5, %p4045_p0 }
  0x3c   : > { %p3706_p9 = pneg %p3705_p6 }
  0x3e   : > { %p3711_p13 = pnand %p3709_p10, %p3706_p9 }
  0x40   : > { %3714 = shalt.err (!%p3711_p13)
}
  0x41   : > { %s3715_s22 = scalar_lea.vmem %s4035_s30, 2048  ;;  %p3723_p4 = scmp.lt.s32.totalorder %s4035_s30, %s4035_s30 }
  0x42   : > { %p3716_p1 = scmp.ne.s32.totalorder %s4035_s30, %s3715_s22  ;;  %p3724_p7 = scmp.lt.s32.totalorder %s3715_s22, %s3715_s22 }
  0x44   : > { %p3718_p2 = pnand %p3716_p1, %p4045_p0  ;;  %p3725_p8 = por %p3724_p7, %p3723_p4 }
  0x46   : > { %p3719_p3 = pneg %p3718_p2 }
  0x48   : > { %p3726_p11 = pnand %p3725_p8, %p3719_p3 }
  0x4a   : > { %3729 = shalt.err (!%p3726_p11)
}
  0x4b   : > { %s3894_s28 = smov 128   ;;  %s3895_s12 = smov 8  }
  0x4c   : > { %3431 = dma.hbm_to_vmem [thread:$0]  (!%p4031_p12), %s4764_s9, 2048, %s4035_s30, [#allocation9], %s3894_s28, %s3894_s28, %s3895_s12  }
  0x4d   : > { %s3896_s17 = smov [#allocation2]   ;;  %s3897_s16 = smov [#allocation7]  }
  0x4e   : > { %s364_s19 = sshll.u32 %s3896_s17, 4  ;;  %s399_s24 = sshll.u32 %s3897_s16, 4  ;;  %s365_s19 = int_to_ptr.vmem [resolvable:$true] %s364_s19  ;;  %s4087_s24 = int_to_ptr.vmem [resolvable:$true] %s399_s24 }
  0x4f   : > { %s3730_s27 = scalar_lea.hbm %s4758_s3, 2048 }
  0x50   : > { %p3731_p5 = scmp.ne.s32.totalorder %s4758_s3, %s3730_s27  ;;  %p3737_p10 = scmp.lt.u32.totalorder %s3730_s27, %s4758_s3 }
  0x52   : > { %p3733_p6 = pnand %p3731_p5, %p4045_p0 }
  0x54   : > { %p3734_p9 = pneg %p3733_p6 }
  0x56   : > { %p3739_p13 = pnand %p3737_p10, %p3734_p9 }
  0x58   : > { %3742 = shalt.err (!%p3739_p13)
}
  0x59   : > { %s3743_s28 = scalar_lea.vmem %s365_s19, 2048  ;;  %p3751_p4 = scmp.lt.s32.totalorder %s365_s19, %s365_s19 }
  0x5a   : > { %p3744_p1 = scmp.ne.s32.totalorder %s365_s19, %s3743_s28  ;;  %p3752_p7 = scmp.lt.s32.totalorder %s3743_s28, %s3743_s28 }
  0x5c   : > { %p3746_p2 = pnand %p3744_p1, %p4045_p0  ;;  %p3753_p8 = por %p3752_p7, %p3751_p4 }
  0x5e   : > { %p3747_p3 = pneg %p3746_p2 }
  0x60   : > { %p3754_p11 = pnand %p3753_p8, %p3747_p3 }
  0x62   : > { %3757 = shalt.err (!%p3754_p11)
}
  0x63   : > { %s4800_s7 = smov 4   ;;  %s4801_s14 = smov 64  }
  0x64   : > { %3422 = dma.hbm_to_vmem [thread:$0]  (!%p4031_p12), %s4758_s3, 2048, %s365_s19, [#allocation3], %s4801_s14, %s4801_s14, %s4800_s7  }
  0x65   : > { %s3758_s16 = scalar_lea.hbm %s4763_s8, 2048 }
  0x66   : > { %p3759_p5 = scmp.ne.s32.totalorder %s4763_s8, %s3758_s16  ;;  %p3765_p10 = scmp.lt.u32.totalorder %s3758_s16, %s4763_s8 }
  0x68   : > { %p3761_p6 = pnand %p3759_p5, %p4045_p0 }
  0x6a   : > { %p3762_p9 = pneg %p3761_p6 }
  0x6c   : > { %p3767_p13 = pnand %p3765_p10, %p3762_p9 }
  0x6e   : > { %3770 = shalt.err (!%p3767_p13)
}
  0x6f   : > { %s3771_s19 = scalar_lea.vmem %s4087_s24, 2048  ;;  %p3779_p4 = scmp.lt.s32.totalorder %s4087_s24, %s4087_s24 }
  0x70   : > { %p3772_p1 = scmp.ne.s32.totalorder %s4087_s24, %s3771_s19  ;;  %p3780_p7 = scmp.lt.s32.totalorder %s3771_s19, %s3771_s19 }
  0x72   : > { %p3774_p2 = pnand %p3772_p1, %p4045_p0  ;;  %p3781_p8 = por %p3780_p7, %p3779_p4 }
  0x74   : > { %p3775_p3 = pneg %p3774_p2 }
  0x76   : > { %p3782_p11 = pnand %p3781_p8, %p3775_p3 }
  0x78   : > { %3785 = shalt.err (!%p3782_p11)
}
  0x79   : > { %3428 = dma.hbm_to_vmem [thread:$0]  (!%p4031_p12), %s4763_s8, 2048, %s4087_s24, [#allocation6], %s4801_s14, %s4801_s14, %s4800_s7  }
  0x7a   : > { %s3898_s27 = smov [#allocation10]   ;;  %s3786_s15 = scalar_lea.hbm %s4766_s11, 32 }
  0x7b   : > { %s429_s18 = sshll.u32 %s3898_s27, 4  ;;  %p3787_p5 = scmp.ne.s32.totalorder %s4766_s11, %s3786_s15  ;;  %s430_s18 = int_to_ptr.vmem [resolvable:$true] %s429_s18 }
  0x7c   : > { %p3793_p10 = scmp.lt.u32.totalorder %s3786_s15, %s4766_s11 }
  0x7d   : > { %p3789_p6 = pnand %p3787_p5, %p4045_p0 }
  0x7f   : > { %p3790_p9 = pneg %p3789_p6 }
  0x81   : > { %p3795_p13 = pnand %p3793_p10, %p3790_p9 }
  0x83   : > { %3798 = shalt.err (!%p3795_p13)
}
  0x84   : > { %s3799_s24 = scalar_lea.vmem %s430_s18, 32  ;;  %p3807_p4 = scmp.lt.s32.totalorder %s430_s18, %s430_s18 }
  0x85   : > { %p3800_p1 = scmp.ne.s32.totalorder %s430_s18, %s3799_s24  ;;  %p3808_p7 = scmp.lt.s32.totalorder %s3799_s24, %s3799_s24 }
  0x87   : > { %p3802_p2 = pnand %p3800_p1, %p4045_p0  ;;  %p3809_p8 = por %p3808_p7, %p3807_p4 }
  0x89   : > { %p3803_p3 = pneg %p3802_p2 }
  0x8b   : > { %p3810_p11 = pnand %p3809_p8, %p3803_p3 }
  0x8d   : > { %3813 = shalt.err (!%p3810_p11)
}
  0x8e   : > { %3434 = dma.hbm_to_vmem [thread:$0]  (!%p4031_p12), %s4766_s11, 32, %s430_s18, [#allocation9]  }
  0x8f   : > { %p4802_p5 = scmp.ne.s32.totalorder %s4796_s20, 0 }
  0x90   : > { %p4803_p6 = scmp.eq.s32.totalorder (!%p4802_p5), %s3995_s29, 0 }
  0x91   : > { %461 = sbr.rel (%p4802_p5) target bundleno = 2191 (0x88f), region = 68 }
  0x98   : > { %3859 = dma.done.wait (%p4803_p6), [#allocation3], 2048   ;;  %p4804_p0 = pmov %p4803_p6 }
  0x9a   : > { %3861 = vsyncadd (%p4804_p0), [#allocation3], 4294965248  ;;  %p4805_p9 = pmov %p4804_p0 }
  0x9b   : > { %p4806_p10 = pmov %p4804_p0 }
  0x9c   : > { %3863 = dma.done.wait (%p4805_p9), [#allocation6], 2432  }
  0x9d   : > { %3865 = vsyncadd (%p4806_p10), [#allocation6], 4294964864  ;;  %p4807_p13 = pmov %p4804_p0 }
  0x9e   : > { %p4808_p12 = pmov %p4804_p0 }
  0x9f   : > { %3867 = dma.done.wait (%p4807_p13), [#allocation9], 2080  }
  0xa0   : > { %3869 = vsyncadd (%p4808_p12), [#allocation9], 4294965216  ;;  %s2864_s20 = sshll.u32 %s3995_s29, 4  ;;  %v3495_v0 = vld [vmem:[%s4757_s2 + $0x40] sm:$0xff]   ;;  %v3497_v2 = vld [vmem:[%s4757_s2 + $0x48] sm:$0xff]   ;;  %s3899_s25 = smov 96  }
  0xa1   : > { %v3496_v1 = vld [vmem:[%s4757_s2] sm:$0xff]   ;;  %3004 = vmatprep.subr.bf16.mxu0 %v3495_v0  ;;  %p533_p1 = scmp.lt.s32.totalorder %s2864_s20, 31  ;;  %v3498_v3 = vld [vmem:[%s4757_s2 + $0x8] sm:$0xff]   ;;  %v3499_v4 = vld [vmem:[%s4757_s2 + $0x50] sm:$0xff]   ;;  %vm1615_vm0 = vcmask 130048   ;;  %vm2659_vm1 = vcmask 523264  }
  0xa2   : > { %3005 = vmatpush3.bf16.msra.mxu0 %v3496_v1  ;;  %v3500_v5 = vld [vmem:[%s4757_s2 + $0x10] sm:$0xff]   ;;  %v3501_v6 = vld [vmem:[%s4757_s2 + $0x58] sm:$0xff]   ;;  %v3503_v8 = vld [vmem:[%s4757_s2 + $0x60] sm:$0xff]   ;;  %vm1749_vm2 = vcmask 261120   ;;  %s522_s21 = sand.u32 1, %s3880_s26   ;;  %s4809_s27 = sld [smem:[#allocation21_spill]] }
  0xa3   : > { %3006 = vmatprep.subr.bf16.mxu0 %v3497_v2  ;;  %s4822_s20 = smov (!%p533_p1, %s2864_s20), 31  ;;  %v3502_v7 = vld [vmem:[%s4757_s2 + $0x18] sm:$0xff]   ;;  %v3504_v9 = vld [vmem:[%s4757_s2 + $0x20] sm:$0xff]   ;;  %v3505_v10 = vld [vmem:[%s4757_s2 + $0x68] sm:$0xff]   ;;  %s2863_s28 = sshll.u32 %s522_s21, 7 }
  0xa4   : > { %s2985_s7 = sshll.u32 %s4822_s20, 4  ;;  %v3506_v14 = vld [vmem:[%s4757_s2 + $0x28] sm:$0xff]   ;;  %v3507_v15 = vld [vmem:[%s4757_s2 + $0x70] sm:$0xff]   ;;  %v3509_v17 = vld [vmem:[%s4757_s2 + $0x78] sm:$0xff]   ;;  %s2868_s17 = sshll.u32 %s4822_s20, 3 }
  0xa5   : > { %s4202_s18 = scalar_lea.vmem %s4755_s0, %s2985_s7  ;;  %v3508_v16 = vld [vmem:[%s4757_s2 + $0x30] sm:$0xff]   ;;  %v3510_v18 = vld [vmem:[%s4757_s2 + $0x38] sm:$0xff]   ;;  %v3511_v23 = vld [vmem:[#allocation2] sm:$0xff]   ;;  %s4322_s22 = scalar_lea.vmem %s4756_s1, %s2868_s17 }
  0xa6   : > { %3007 = vmatpush3.bf16.msra.mxu0 %v3498_v3  ;;  %v556_v11 = vld [vmem:[%s4202_s18 + $0x8] sm:$0xff]  ;;  %v558_v12 = vld [vmem:[%s4202_s18 + $0x18] sm:$0xff]  ;;  %v555_v19 = vld [vmem:[%s4202_s18] sm:$0xff]  ;;  %3167 = vmatprep.subr.bf16.mxu1 %v3511_v23  ;;  %s4415_s14 = scalar_lea.vmem %s4768_s13, %s2868_s17  ;;  %s4661_s12 = scalar_lea.vmem [#allocation11], %s2863_s28 }
  0xa7   : > { %3008 = vmatprep.subr.bf16.mxu0 %v3499_v4  ;;  %v620_v13 = vpack.c.bf16 %v558_v12, %v556_v11  ;;  %v557_v20 = vld [vmem:[%s4202_s18 + $0x10] sm:$0xff]  ;;  %v560_v21 = vld [vmem:[%s4202_s18 + $0x28] sm:$0xff]  ;;  %v562_v22 = vld [vmem:[%s4202_s18 + $0x38] sm:$0xff]  ;;  %3168 = vmatpush3.bf16.msra.mxu1 %v3511_v23  ;;  %s2696_s17 = sshll.u32 %s4661_s12, 4  ;;  %s3901_s19 = smov [#allocation11]   ;;  %s4708_s17 = int_to_ptr.vmem [resolvable:$true] %s2696_s17 }
  0xa8   : > { %v3512_v24 = vld [vmem:[#allocation2 + $0x8] sm:$0xff]   ;;  %v3513_v25 = vld [vmem:[#allocation2 + $0x10] sm:$0xff]   ;;  %v619_v26 = vpack.c.bf16 %v557_v20, %v555_v19  ;;  %v622_v27 = vpack.c.bf16 %v562_v22, %v560_v21  ;;  %v559_v28 = vld [vmem:[%s4202_s18 + $0x20] sm:$0xff]  ;;  %s3814_s30 = scalar_lea.vmem %s4708_s17, 2048  ;;  %p4811_p3 = scmp.ne.s32.totalorder %s4809_s27, 0 }
  0xa9   : > { %767 = vmatprep.mubr.bf16.mxu0 %v620_v13  ;;  %3169 = vmatprep.subr.bf16.mxu1 %v3512_v24  ;;  %v561_v29 = vld [vmem:[%s4202_s18 + $0x30] sm:$0xff]  ;;  %v564_v30 = vld [vmem:[%s4202_s18 + $0x48] sm:$0xff]  ;;  %v566_v31 = vld [vmem:[%s4202_s18 + $0x58] sm:$0xff]  ;;  %p3815_p2 = scmp.ne.s32.totalorder %s4708_s17, %s3814_s30  ;;  %s3818_s24 = sshll.u32 %s3901_s19, 4  ;;  %s3819_s24 = int_to_ptr.vmem [resolvable:$false] %s3818_s24 }
  0xaa   : > { %3009 = vmatpush3.bf16.msra.mxu0 %v3500_v5  ;;  %v621_v32 = vpack.c.bf16 %v561_v29, %v559_v28  ;;  %v624_v33 = vpack.c.bf16 %v566_v31, %v564_v30  ;;  %v563_v34 = vld [vmem:[%s4202_s18 + $0x40] sm:$0xff]  ;;  %v565_v35 = vld [vmem:[%s4202_s18 + $0x50] sm:$0xff]  ;;  %v568_v36 = vld [vmem:[%s4202_s18 + $0x68] sm:$0xff]  ;;  %s3820_s7 = scalar_lea.vmem %s3819_s24, 4096  ;;  %p3821_p8 = scmp.lt.s32.totalorder %s4708_s17, %s3819_s24 }
  0xab   : > { %3010 = vmatprep.subr.bf16.mxu0 %v3501_v6  ;;  %3170 = vmatpush3.bf16.msra.mxu1 %v3512_v24  ;;  %v570_v37 = vld [vmem:[%s4202_s18 + $0x78] sm:$0xff]  ;;  %v623_v38 = vpack.c.bf16 %v565_v35, %v563_v34  ;;  %v567_v40 = vld [vmem:[%s4202_s18 + $0x60] sm:$0xff]  ;;  %v569_v41 = vld [vmem:[%s4202_s18 + $0x70] sm:$0xff]  ;;  %p3816_p4 = pnand %p3815_p2, %p4811_p3  ;;  %p3822_p11 = scmp.lt.s32.totalorder %s3820_s7, %s3814_s30 }
  0xac   : > { %3171 = vmatprep.subr.bf16.mxu1 %v3513_v25  ;;  %v626_v39 = vpack.c.bf16 %v570_v37, %v568_v36  ;;  %v572_v42 = vld [vmem:[%s4202_s18 + $0x88] sm:$0xff]  ;;  %v574_v43 = vld [vmem:[%s4202_s18 + $0x98] sm:$0xff]  ;;  %v625_v44 = vpack.c.bf16 %v569_v41, %v567_v40  ;;  %v571_v46 = vld [vmem:[%s4202_s18 + $0x80] sm:$0xff] }
  0xad   : > { %v628_v45 = vpack.c.bf16 %v574_v43, %v572_v42  ;;  %v573_v47 = vld [vmem:[%s4202_s18 + $0x90] sm:$0xff]  ;;  %v576_v48 = vld [vmem:[%s4202_s18 + $0xa8] sm:$0xff]  ;;  %v578_v49 = vld [vmem:[%s4202_s18 + $0xb8] sm:$0xff]  ;;  %p3817_p7 = pneg %p3816_p4  ;;  %p3823_p5 = por %p3822_p11, %p3821_p8 }
  0xae   : > { %3011 = vmatpush3.bf16.msra.mxu0 %v3502_v7  ;;  %v627_v50 = vpack.c.bf16 %v573_v47, %v571_v46  ;;  %v630_v51 = vpack.c.bf16 %v578_v49, %v576_v48  ;;  %v575_v52 = vld [vmem:[%s4202_s18 + $0xa0] sm:$0xff]  ;;  %v577_v53 = vld [vmem:[%s4202_s18 + $0xb0] sm:$0xff]  ;;  %v580_v54 = vld [vmem:[%s4202_s18 + $0xc8] sm:$0xff] }
  0xaf   : > { %3012 = vmatprep.subr.bf16.mxu0 %v3503_v8  ;;  %3172 = vmatpush3.bf16.msra.mxu1 %v3513_v25  ;;  %v582_v55 = vld [vmem:[%s4202_s18 + $0xd8] sm:$0xff]  ;;  %v629_v56 = vpack.c.bf16 %v577_v53, %v575_v52  ;;  %v579_v58 = vld [vmem:[%s4202_s18 + $0xc0] sm:$0xff]  ;;  %v581_v59 = vld [vmem:[%s4202_s18 + $0xd0] sm:$0xff]  ;;  %p3824_p6 = pnand %p3823_p5, %p3817_p7 }
  0xb0   : > { %v632_v57 = vpack.c.bf16 %v582_v55, %v580_v54  ;;  %v584_v60 = vld [vmem:[%s4202_s18 + $0xe8] sm:$0xff]  ;;  %v586_v61 = vld [vmem:[%s4202_s18 + $0xf8] sm:$0xff]  ;;  %v631_v62 = vpack.c.bf16 %v581_v59, %v579_v58  ;;  %v583_v0 = vld [vmem:[%s4202_s18 + $0xe0] sm:$0xff] }
  0xb1   : > { %v634_v63 = vpack.c.bf16 %v586_v61, %v584_v60  ;;  %v585_v1 = vld [vmem:[%s4202_s18 + $0xf0] sm:$0xff]  ;;  %v3514_v3 = vld [vmem:[#allocation2 + $0x18] sm:$0xff]   ;;  %v3515_v4 = vld [vmem:[#allocation2 + $0x20] sm:$0xff]   ;;  %s3003_s18 = sshll.u32 %s3995_s29, 11  ;;  %s4714_s29 = scalar_lea.sflag [#allocation4], %s522_s21 }
  0xb2   : > { %3013 = vmatpush3.bf16.msra.mxu0 %v3504_v9  ;;  %v633_v2 = vpack.c.bf16 %v585_v1, %v583_v0  ;;  %3173 = vmatprep.subr.bf16.mxu1 %v3514_v3  ;;  %v3516_v5 = vld [vmem:[#allocation2 + $0x28] sm:$0xff]   ;;  %v3517_v6 = vld [vmem:[#allocation2 + $0x30] sm:$0xff]   ;;  %v3518_v7 = vld [vmem:[#allocation2 + $0x38] sm:$0xff]   ;;  %v635_v9 = vlaneseq }
  0xb3   : > { %3014 = vmatprep.subr.bf16.mxu0 %v3505_v10  ;;  %3174 = vmatpush3.bf16.msra.mxu1 %v3514_v3  ;;  %v3519_v8 = vld [vmem:[#allocation2 + $0x40] sm:$0xff]   ;;  %v3520_v40 = vld [vmem:[#allocation2 + $0x48] sm:$0xff]   ;;  %v3522_v53 = vld [vmem:[#allocation2 + $0x58] sm:$0xff]  }
  0xb4   : > { %3175 = vmatprep.subr.bf16.mxu1 %v3515_v4  ;;  %v4257_v10 = vshrl.u32 %v635_v9, 7  ;;  %v4265_v12 = vld [vmem:[%s4760_s5] sm:$0x7] }
  0xb5   : > { %v3523_v58 = vld [vmem:[#allocation2 + $0x60] sm:$0xff]  }
  0xb6   : > { %3015 = vmatpush3.bf16.msra.mxu0 %v3506_v14  ;;  %v4260_v11 = vsub.s32 0, %v4257_v10 }
  0xb7   : > { %3016 = vmatprep.subr.bf16.mxu0 %v3507_v15  ;;  %3176 = vmatpush3.bf16.msra.mxu1 %v3515_v4 }
  0xb8   : > { %3177 = vmatprep.subr.bf16.mxu1 %v3516_v5  ;;  %v4269_v14 = vrot.slane %v4265_v12, %v4260_v11 }
  0xba   : > { %3017 = vmatpush3.bf16.msra.mxu0 %v3508_v16 }
  0xbb   : > { %3018 = vmatprep.subr.bf16.mxu0 %v3509_v17  ;;  %3178 = vmatpush3.bf16.msra.mxu1 %v3516_v5 }
  0xbc   : > { %3179 = vmatprep.subr.bf16.mxu1 %v3517_v6 }
  0xbe   : > { %3019 = vmatpush3.bf16.msra.mxu0 %v3510_v18 }
  0xbf   : > { %3180 = vmatpush3.bf16.msra.mxu1 %v3517_v6 }
  0xc0   : > { %3181 = vmatprep.subr.bf16.mxu1 %v3518_v7 }
  0xc1   : > { %768 = vmatmul.mubr.bf16.vlgmr.msra.gmra.mrb[0].mxu0 %v619_v26 }
  0xc2   : > { %775 = vmatprep.mubr.bf16.mxu0 %v622_v27 }
  0xc3   : > { %3182 = vmatpush3.bf16.msra.mxu1 %v3518_v7 }
  0xc4   : > { %3199 = vmatprep.subr.bf16.mxu1 %v3519_v8 }
  0xc9   : > { %776 = vmatmul.mubr.bf16.gmra.mrb[4].mxu0 %v621_v32 }
  0xca   : > { %783 = vmatprep.mubr.bf16.mxu0 %v624_v33 }
  0xd1   : > { %784 = vmatmul.mubr.bf16.gmra.mrb[8].mxu0 %v623_v38 }
  0xd2   : > { %791 = vmatprep.mubr.bf16.mxu0 %v626_v39 }
  0xd9   : > { %792 = vmatmul.mubr.bf16.gmra.mrb[12].mxu0 %v625_v44 }
  0xda   : > { %799 = vmatprep.mubr.bf16.mxu0 %v628_v45  ;;  %v3521_v45 = vld [vmem:[#allocation2 + $0x50] sm:$0xff]  }
  0xe1   : > { %800 = vmatmul.mubr.bf16.gmra.mrb[16].mxu0 %v627_v50 }
  0xe2   : > { %807 = vmatprep.mubr.bf16.mxu0 %v630_v51 }
  0xe9   : > { %808 = vmatmul.mubr.bf16.gmra.mrb[20].mxu0 %v629_v56 }
  0xea   : > { %815 = vmatprep.mubr.bf16.mxu0 %v632_v57 }
  0xf1   : > { %816 = vmatmul.mubr.bf16.gmra.mrb[24].mxu0 %v631_v62 }
  0xf2   : > { %823 = vmatprep.mubr.bf16.mxu0 %v634_v63 }
  0xf9   : > { %824 = vmatmul.mubr.bf16.gmra.mrb[28].mxu0 %v633_v2  ;;  %v3524_v2 = vld [vmem:[#allocation2 + $0x68] sm:$0xff]  }
 0x194   : > { %v3020_v13 = vpop.f32.mrb[0].mxu0 }
 0x195   : > { %v3021_v15 = vpop.f32.mrb[1].mxu0 }
 0x196   : > { %v3022_v16 = vadd.f32 %v3021_v15, %v3020_v13  ;;  %v3023_v17 = vpop.f32.mrb[2].mxu0 }
 0x197   : > { %v3024_v18 = vpop.f32.mrb[3].mxu0 }
 0x198   : > { %v3025_v19 = vadd.f32 %v3024_v18, %v3023_v17  ;;  %v770_v20 = vadd.f32 %v3022_v16, %v4269_v14 }
 0x19a   : > { %v773_v21 = vadd.f32 %v3025_v19, %v4269_v14  ;;  %v832_v23 = vmax.f32 %v770_v20, 0.0 }
 0x19c   : > { %v3026_v22 = vpop.f32.mrb[4].mxu0  ;;  %v833_v24 = vmax.f32 %v773_v21, 0.0 }
 0x19d   : > { %v3027_v25 = vpop.f32.mrb[5].mxu0 }
 0x19e   : > { %v3028_v26 = vadd.f32 %v3027_v25, %v3026_v22  ;;  %v3029_v27 = vpop.f32.mrb[6].mxu0  ;;  %v864_v28 = vpack.c.bf16 %v833_v24, %v832_v23 }
 0x19f   : > { %v3030_v29 = vpop.f32.mrb[7].mxu0 }
 0x1a0   : > { %v778_v30 = vadd.f32 %v3028_v26, %v4269_v14  ;;  %v3031_v31 = vadd.f32 %v3030_v29, %v3029_v27  ;;  %3183 = vmatprep.mubr.bf16.mxu1 %v864_v28 }
 0x1a2   : > { %v781_v32 = vadd.f32 %v3031_v31, %v4269_v14  ;;  %v834_v33 = vmax.f32 %v778_v30, 0.0 }
 0x1a4   : > { %v835_v34 = vmax.f32 %v781_v32, 0.0  ;;  %v3032_v35 = vpop.f32.mrb[8].mxu0 }
 0x1a5   : > { %v3033_v36 = vpop.f32.mrb[9].mxu0 }
 0x1a6   : > { %v3034_v37 = vadd.f32 %v3033_v36, %v3032_v35  ;;  %v3035_v38 = vpop.f32.mrb[10].mxu0  ;;  %v865_v39 = vpack.c.bf16 %v835_v34, %v834_v33 }
 0x1a7   : > { %v3036_v41 = vpop.f32.mrb[11].mxu0 }
 0x1a8   : > { %v786_v42 = vadd.f32 %v3034_v37, %v4269_v14  ;;  %v3037_v43 = vadd.f32 %v3036_v41, %v3035_v38  ;;  %3184 = vmatmul.mubr.bf16.vlgmr.msra.gmra.mrb[0].mxu1 %v865_v39 }
 0x1a9   : > { %3200 = vmatpush3.bf16.msra.mxu1 %v3519_v8 }
 0x1aa   : > { %v789_v44 = vadd.f32 %v3037_v43, %v4269_v14  ;;  %3201 = vmatprep.subr.bf16.mxu1 %v3520_v40  ;;  %v836_v46 = vmax.f32 %v786_v42, 0.0 }
 0x1ac   : > { %v837_v47 = vmax.f32 %v789_v44, 0.0  ;;  %v3038_v48 = vpop.f32.mrb[12].mxu0 }
 0x1ad   : > { %v3039_v49 = vpop.f32.mrb[13].mxu0  ;;  %3202 = vmatpush3.bf16.msra.mxu1 %v3520_v40 }
 0x1ae   : > { %v3040_v50 = vadd.f32 %v3039_v49, %v3038_v48  ;;  %v3041_v51 = vpop.f32.mrb[14].mxu0  ;;  %v866_v52 = vpack.c.bf16 %v837_v47, %v836_v46  ;;  %3203 = vmatprep.subr.bf16.mxu1 %v3521_v45  ;;  %v3525_v47 = vld [vmem:[#allocation2 + $0x70] sm:$0xff]   ;;  %v3526_v48 = vld [vmem:[#allocation2 + $0x78] sm:$0xff]   ;;  %v3527_v49 = vld [vmem:[%s4759_s4] sm:$0xff]  }
 0x1af   : > { %v3042_v54 = vpop.f32.mrb[15].mxu0  ;;  %3231 = vmatprep.subr.bf16.mxu0 %v3527_v49 }
 0x1b0   : > { %v794_v55 = vadd.f32 %v3040_v50, %v4269_v14  ;;  %v3043_v56 = vadd.f32 %v3042_v54, %v3041_v51  ;;  %3187 = vmatprep.mubr.bf16.mxu1 %v866_v52  ;;  %v3528_v50 = vld [vmem:[%s4759_s4 + $0x8] sm:$0xff]   ;;  %3232 = vmatpush3.bf16.msra.mxu0 %v3527_v49  ;;  %v3530_v51 = vld [vmem:[%s4759_s4 + $0x18] sm:$0xff]   ;;  %v3531_v52 = vld [vmem:[%s4759_s4 + $0x20] sm:$0xff]   ;;  %v4306_v54 = vsub.s32 1, %v4257_v10 }
 0x1b1   : > { %3204 = vmatpush3.bf16.msra.mxu1 %v3521_v45  ;;  %3233 = vmatprep.subr.bf16.mxu0 %v3528_v50 }
 0x1b2   : > { %v797_v57 = vadd.f32 %v3043_v56, %v4269_v14  ;;  %3205 = vmatprep.subr.bf16.mxu1 %v3522_v53  ;;  %v838_v59 = vmax.f32 %v794_v55, 0.0  ;;  %v875_v55 = vrot.slane %v4265_v12, %v4306_v54 }
 0x1b4   : > { %v839_v60 = vmax.f32 %v797_v57, 0.0  ;;  %v3044_v61 = vpop.f32.mrb[16].mxu0  ;;  %3234 = vmatpush3.bf16.msra.mxu0 %v3528_v50 }
 0x1b5   : > { %v3045_v62 = vpop.f32.mrb[17].mxu0  ;;  %3206 = vmatpush3.bf16.msra.mxu1 %v3522_v53  ;;  %v3532_v53 = vld [vmem:[%s4759_s4 + $0x28] sm:$0xff]  }
 0x1b6   : > { %v3046_v63 = vadd.f32 %v3045_v62, %v3044_v61  ;;  %v3047_v0 = vpop.f32.mrb[18].mxu0  ;;  %v867_v1 = vpack.c.bf16 %v839_v60, %v838_v59  ;;  %3207 = vmatprep.subr.bf16.mxu1 %v3523_v58 }
 0x1b7   : > { %v3048_v3 = vpop.f32.mrb[19].mxu0 }
 0x1b8   : > { %v802_v4 = vadd.f32 %v3046_v63, %v4269_v14  ;;  %v3049_v5 = vadd.f32 %v3048_v3, %v3047_v0  ;;  %3188 = vmatmul.mubr.bf16.gmra.mrb[4].mxu1 %v867_v1 }
 0x1b9   : > { %3208 = vmatpush3.bf16.msra.mxu1 %v3523_v58 }
 0x1ba   : > { %v805_v6 = vadd.f32 %v3049_v5, %v4269_v14  ;;  %3209 = vmatprep.subr.bf16.mxu1 %v3524_v2  ;;  %v840_v7 = vmax.f32 %v802_v4, 0.0 }
 0x1bc   : > { %v841_v8 = vmax.f32 %v805_v6, 0.0  ;;  %v3050_v9 = vpop.f32.mrb[20].mxu0 }
 0x1bd   : > { %v3051_v13 = vpop.f32.mrb[21].mxu0  ;;  %3210 = vmatpush3.bf16.msra.mxu1 %v3524_v2 }
 0x1be   : > { %v3052_v15 = vadd.f32 %v3051_v13, %v3050_v9  ;;  %v3053_v16 = vpop.f32.mrb[22].mxu0  ;;  %v868_v17 = vpack.c.bf16 %v841_v8, %v840_v7  ;;  %3211 = vmatprep.subr.bf16.mxu1 %v3525_v47 }
 0x1bf   : > { %v3054_v18 = vpop.f32.mrb[23].mxu0 }
 0x1c0   : > { %v810_v19 = vadd.f32 %v3052_v15, %v4269_v14  ;;  %v3055_v20 = vadd.f32 %v3054_v18, %v3053_v16  ;;  %3191 = vmatprep.mubr.bf16.mxu1 %v868_v17 }
 0x1c1   : > { %3212 = vmatpush3.bf16.msra.mxu1 %v3525_v47 }
 0x1c2   : > { %v813_v21 = vadd.f32 %v3055_v20, %v4269_v14  ;;  %v842_v22 = vmax.f32 %v810_v19, 0.0  ;;  %3213 = vmatprep.subr.bf16.mxu1 %v3526_v48 }
 0x1c4   : > { %v843_v23 = vmax.f32 %v813_v21, 0.0  ;;  %v3056_v24 = vpop.f32.mrb[24].mxu0 }
 0x1c5   : > { %v3057_v25 = vpop.f32.mrb[25].mxu0  ;;  %3214 = vmatpush3.bf16.msra.mxu1 %v3526_v48 }
 0x1c6   : > { %v3058_v26 = vadd.f32 %v3057_v25, %v3056_v24  ;;  %v3059_v27 = vpop.f32.mrb[26].mxu0  ;;  %v869_v28 = vpack.c.bf16 %v843_v23, %v842_v22 }
 0x1c7   : > { %v3060_v29 = vpop.f32.mrb[27].mxu0 }
 0x1c8   : > { %v818_v30 = vadd.f32 %v3058_v26, %v4269_v14  ;;  %v3061_v31 = vadd.f32 %v3060_v29, %v3059_v27  ;;  %3192 = vmatmul.mubr.bf16.gmra.mrb[8].mxu1 %v869_v28 }
 0x1ca   : > { %v821_v32 = vadd.f32 %v3061_v31, %v4269_v14  ;;  %v844_v33 = vmax.f32 %v818_v30, 0.0 }
 0x1cc   : > { %v845_v34 = vmax.f32 %v821_v32, 0.0  ;;  %v3062_v35 = vpop.f32.mrb[28].mxu0 }
 0x1cd   : > { %v3063_v36 = vpop.f32.mrb[29].mxu0 }
 0x1ce   : > { %v3064_v37 = vadd.f32 %v3063_v36, %v3062_v35  ;;  %v3065_v38 = vpop.f32.mrb[30].mxu0  ;;  %v870_v39 = vpack.c.bf16 %v845_v34, %v844_v33 }
 0x1cf   : > { %v3066_v40 = vpop.f32.mrb[31].mxu0 }
 0x1d0   : > { %v826_v41 = vadd.f32 %v3064_v37, %v4269_v14  ;;  %v3067_v42 = vadd.f32 %v3066_v40, %v3065_v38  ;;  %3195 = vmatprep.mubr.bf16.mxu1 %v870_v39 }
 0x1d2   : > { %v829_v43 = vadd.f32 %v3067_v42, %v4269_v14  ;;  %v846_v44 = vmax.f32 %v826_v41, 0.0  ;;  %v3529_v14 = vld [vmem:[%s4759_s4 + $0x10] sm:$0xff]  }
 0x1d3   : > { %3235 = vmatprep.subr.bf16.mxu0 %v3529_v14 }
 0x1d4   : > { %v847_v45 = vmax.f32 %v829_v43, 0.0  ;;  %3236 = vmatpush3.bf16.msra.mxu0 %v3529_v14 }
 0x1d5   : > { %3237 = vmatprep.subr.bf16.mxu0 %v3530_v51 }
 0x1d6   : > { %v871_v46 = vpack.c.bf16 %v847_v45, %v846_v44 }
 0x1d8   : > { %3196 = vmatmul.mubr.bf16.gmra.mrb[12].mxu1 %v871_v46  ;;  %3238 = vmatpush3.bf16.msra.mxu0 %v3530_v51  ;;  %v3533_v51 = vld [vmem:[%s4759_s4 + $0x30] sm:$0xff]  }
 0x1d9   : > { %3239 = vmatprep.subr.bf16.mxu0 %v3531_v52 }
 0x1dc   : > { %3240 = vmatpush3.bf16.msra.mxu0 %v3531_v52  ;;  %v3534_v52 = vld [vmem:[%s4759_s4 + $0x38] sm:$0xff]  }
 0x1dd   : > { %3241 = vmatprep.subr.bf16.mxu0 %v3532_v53 }
 0x1e0   : > { %3242 = vmatpush3.bf16.msra.mxu0 %v3532_v53  ;;  %v4325_v53 = vld [vmem:[%s4322_s22] sm:$0xff] }
 0x1e1   : > { %3243 = vmatprep.subr.bf16.mxu0 %v3533_v51 }
 0x1e4   : > { %3244 = vmatpush3.bf16.msra.mxu0 %v3533_v51 }
 0x1e5   : > { %3245 = vmatprep.subr.bf16.mxu0 %v3534_v52 }
 0x1e8   : > { %3246 = vmatpush3.bf16.msra.mxu0 %v3534_v52 }
 0x27b   : > { %v3185_v56 = vpop.f32.mrb[0].mxu1 }
 0x27c   : > { %v967_v57 = vadd.f32 %v3185_v56, %v875_v55  ;;  %v958_v58 = vpop.f32.mrb[1].mxu1  ;;  %v4331_v56 = vld [vmem:[%s4322_s22 + $0x10] sm:$0xff] }
 0x27d   : > { %v959_v59 = vadd.f32 %v958_v58, %v875_v55  ;;  %v3186_v60 = vpop.f32.mrb[2].mxu1  ;;  %v4336_v58 = vld [vmem:[%s4322_s22 + $0x18] sm:$0xff] }
 0x27e   : > { %v970_v61 = vadd.f32 %v3186_v60, %v875_v55  ;;  %v961_v62 = vpop.f32.mrb[3].mxu1  ;;  %v1023_v0 = vmax.f32 %v967_v57, 0.0  ;;  %v1064_v60 = vsub.s32 2, %v4257_v10 }
 0x27f   : > { %v962_v63 = vadd.f32 %v961_v62, %v875_v55  ;;  %v1021_v2 = vmax.f32 %v959_v59, 0.0  ;;  %v1578_v59 = vpack.c.bf16 %v4336_v58, %v4331_v56 }
 0x280   : > { %v1024_v1 = vmax.f32 %v970_v61, 0.0  ;;  %v1065_v61 = vrot.slane %v4265_v12, %v1064_v60 }
 0x281   : > { %v1022_v3 = vmax.f32 %v962_v63, 0.0 }
 0x282   : > { %v1055_v4 = vpack.c.bf16 %v1024_v1, %v1023_v0 }
 0x283   : > { %v1054_v5 = vpack.c.bf16 %v1022_v3, %v1021_v2 }
 0x285   : > { %3215 = vmatprep.mubr.bf16.mxu1 %v1054_v5 }
 0x286   : > { %3216 = vmatmul.mubr.bf16.vlgmr.msra.gmra.mrb[16].mxu1 %v1055_v4 }
 0x28b   : > { %v3189_v6 = vpop.f32.mrb[4].mxu1 }
 0x28c   : > { %v983_v7 = vadd.f32 %v3189_v6, %v875_v55  ;;  %v974_v8 = vpop.f32.mrb[5].mxu1 }
 0x28d   : > { %v975_v9 = vadd.f32 %v974_v8, %v875_v55  ;;  %v3190_v13 = vpop.f32.mrb[6].mxu1 }
 0x28e   : > { %v986_v15 = vadd.f32 %v3190_v13, %v875_v55  ;;  %v977_v16 = vpop.f32.mrb[7].mxu1  ;;  %v1027_v18 = vmax.f32 %v983_v7, 0.0 }
 0x28f   : > { %v978_v17 = vadd.f32 %v977_v16, %v875_v55  ;;  %v1025_v20 = vmax.f32 %v975_v9, 0.0 }
 0x290   : > { %v1028_v19 = vmax.f32 %v986_v15, 0.0 }
 0x291   : > { %v1026_v21 = vmax.f32 %v978_v17, 0.0 }
 0x292   : > { %v1057_v22 = vpack.c.bf16 %v1028_v19, %v1027_v18 }
 0x293   : > { %v1056_v23 = vpack.c.bf16 %v1026_v21, %v1025_v20 }
 0x295   : > { %3219 = vmatprep.mubr.bf16.mxu1 %v1056_v23 }
 0x296   : > { %3220 = vmatmul.mubr.bf16.gmra.mrb[20].mxu1 %v1057_v22 }
 0x29b   : > { %v3193_v24 = vpop.f32.mrb[8].mxu1 }
 0x29c   : > { %v999_v25 = vadd.f32 %v3193_v24, %v875_v55  ;;  %v990_v26 = vpop.f32.mrb[9].mxu1 }
 0x29d   : > { %v991_v27 = vadd.f32 %v990_v26, %v875_v55  ;;  %v3194_v28 = vpop.f32.mrb[10].mxu1 }
 0x29e   : > { %v1002_v29 = vadd.f32 %v3194_v28, %v875_v55  ;;  %v993_v30 = vpop.f32.mrb[11].mxu1  ;;  %v1031_v32 = vmax.f32 %v999_v25, 0.0 }
 0x29f   : > { %v994_v31 = vadd.f32 %v993_v30, %v875_v55  ;;  %v1029_v34 = vmax.f32 %v991_v27, 0.0 }
 0x2a0   : > { %v1032_v33 = vmax.f32 %v1002_v29, 0.0 }
 0x2a1   : > { %v1030_v35 = vmax.f32 %v994_v31, 0.0 }
 0x2a2   : > { %v1059_v36 = vpack.c.bf16 %v1032_v33, %v1031_v32 }
 0x2a3   : > { %v1058_v37 = vpack.c.bf16 %v1030_v35, %v1029_v34 }
 0x2a5   : > { %3223 = vmatprep.mubr.bf16.mxu1 %v1058_v37 }
 0x2a6   : > { %3224 = vmatmul.mubr.bf16.gmra.mrb[24].mxu1 %v1059_v36 }
 0x2ab   : > { %v3197_v38 = vpop.f32.mrb[12].mxu1 }
 0x2ac   : > { %v1015_v39 = vadd.f32 %v3197_v38, %v875_v55  ;;  %v1006_v40 = vpop.f32.mrb[13].mxu1 }
 0x2ad   : > { %v1007_v41 = vadd.f32 %v1006_v40, %v875_v55  ;;  %v3198_v42 = vpop.f32.mrb[14].mxu1 }
 0x2ae   : > { %v1018_v43 = vadd.f32 %v3198_v42, %v875_v55  ;;  %v1009_v44 = vpop.f32.mrb[15].mxu1  ;;  %v1035_v46 = vmax.f32 %v1015_v39, 0.0 }
 0x2af   : > { %v1010_v45 = vadd.f32 %v1009_v44, %v875_v55  ;;  %v1033_v48 = vmax.f32 %v1007_v41, 0.0  ;;  %v4328_v55 = vld [vmem:[%s4322_s22 + $0x8] sm:$0xff] }
 0x2b0   : > { %v1036_v47 = vmax.f32 %v1018_v43, 0.0  ;;  %v1577_v57 = vpack.c.bf16 %v4328_v55, %v4325_v53 }
 0x2b1   : > { %v1034_v49 = vmax.f32 %v1010_v45, 0.0 }
 0x2b2   : > { %v1061_v50 = vpack.c.bf16 %v1036_v47, %v1035_v46  ;;  %1593 = vrot.lane.b32.xlu0 %v1577_v57, %s3899_s25 }
 0x2b3   : > { %v1060_v14 = vpack.c.bf16 %v1034_v49, %v1033_v48 }
 0x2b5   : > { %3227 = vmatprep.mubr.bf16.mxu1 %v1060_v14 }
 0x2b6   : > { %3228 = vmatmul.mubr.bf16.gmra.mrb[28].mxu1 %v1061_v50  ;;  %1595 = vrot.lane.b32.xlu0 %v1578_v59, %s3899_s25 }
 0x359   : > { %v3217_v62 = vpop.f32.mrb[16].mxu1 }
 0x35a   : > { %v1157_v63 = vadd.f32 %v3217_v62, %v1065_v61  ;;  %v1148_v0 = vpop.f32.mrb[17].mxu1 }
 0x35b   : > { %v1149_v1 = vadd.f32 %v1148_v0, %v1065_v61  ;;  %v3218_v2 = vpop.f32.mrb[18].mxu1  ;;  %v4350_v0 = vld [vmem:[%s4322_s22 + $0x28] sm:$0xff] }
 0x35c   : > { %v1160_v3 = vadd.f32 %v3218_v2, %v1065_v61  ;;  %v1151_v4 = vpop.f32.mrb[19].mxu1  ;;  %v1213_v6 = vmax.f32 %v1157_v63, 0.0  ;;  %v4347_v63 = vld [vmem:[%s4322_s22 + $0x20] sm:$0xff]  ;;  %v4359_v2 = vld [vmem:[%s4322_s22 + $0x38] sm:$0xff] }
 0x35d   : > { %v1152_v5 = vadd.f32 %v1151_v4, %v1065_v61  ;;  %v1211_v8 = vmax.f32 %v1149_v1, 0.0  ;;  %v4356_v1 = vld [vmem:[%s4322_s22 + $0x30] sm:$0xff]  ;;  %v4365_v4 = vld [vmem:[%s4322_s22 + $0x40] sm:$0xff] }
 0x35e   : > { %v1214_v7 = vmax.f32 %v1160_v3, 0.0  ;;  %v1580_v3 = vpack.c.bf16 %v4359_v2, %v4356_v1 }
 0x35f   : > { %v1212_v9 = vmax.f32 %v1152_v5, 0.0  ;;  %v4368_v5 = vld [vmem:[%s4322_s22 + $0x48] sm:$0xff] }
 0x360   : > { %v1244_v13 = vpack.c.bf16 %v1214_v7, %v1213_v6  ;;  %v1581_v6 = vpack.c.bf16 %v4368_v5, %v4365_v4  ;;  %v4373_v7 = vld [vmem:[%s4322_s22 + $0x50] sm:$0xff] }
 0x361   : > { %v1243_v15 = vpack.c.bf16 %v1212_v9, %v1211_v8  ;;  %v4376_v8 = vld [vmem:[%s4322_s22 + $0x58] sm:$0xff]  ;;  %v4379_v9 = vld [vmem:[%s4322_s22 + $0x60] sm:$0xff] }
 0x362   : > { %1601 = vrot.lane.b32.xlu0 %v1581_v6, %s3899_s25 }
 0x363   : > { %3247 = vmatprep.mubr.bf16.mxu0 %v1243_v15  ;;  %v4385_v15 = vld [vmem:[%s4322_s22 + $0x68] sm:$0xff] }
 0x364   : > { %3248 = vmatmul.mubr.bf16.vlgmr.msra.gmra.mrb[32].mxu0 %v1244_v13  ;;  %v1582_v13 = vpack.c.bf16 %v4376_v8, %v4373_v7 }
 0x369   : > { %v3221_v16 = vpop.f32.mrb[20].mxu1 }
 0x36a   : > { %v1173_v17 = vadd.f32 %v3221_v16, %v1065_v61  ;;  %v1164_v18 = vpop.f32.mrb[21].mxu1  ;;  %v1583_v16 = vpack.c.bf16 %v4385_v15, %v4379_v9 }
 0x36b   : > { %v1165_v12 = vadd.f32 %v1164_v18, %v1065_v61  ;;  %v3222_v19 = vpop.f32.mrb[22].mxu1  ;;  %v4394_v18 = vld [vmem:[%s4322_s22 + $0x78] sm:$0xff] }
 0x36c   : > { %v1176_v20 = vadd.f32 %v3222_v19, %v1065_v61  ;;  %v1167_v21 = vpop.f32.mrb[23].mxu1  ;;  %v1217_v23 = vmax.f32 %v1173_v17, 0.0  ;;  %v4391_v17 = vld [vmem:[%s4322_s22 + $0x70] sm:$0xff]  ;;  %1605 = vrot.lane.b32.xlu0 %v1583_v16, %s3899_s25  ;;  %s4810_s22 = sld [smem:[#allocation24_spill]] }
 0x36d   : > { %v1168_v22 = vadd.f32 %v1167_v21, %v1065_v61  ;;  %v1215_v25 = vmax.f32 %v1165_v12, 0.0  ;;  %v1584_v12 = vpack.c.bf16 %v4394_v18, %v4391_v17  ;;  %v3535_v19 = vld [vmem:[#allocation5 + $0x10] sm:$0xff]   ;;  %v3536_v21 = vld [vmem:[#allocation5] sm:$0xff]  }
 0x36e   : > { %v1218_v24 = vmax.f32 %v1176_v20, 0.0  ;;  %v1594_v20 = vpop.permute.xlu0 %1593  ;;  %3263 = vmatprep.subr.bf16.mxu1 %v3535_v19 }
 0x36f   : > { %v1216_v26 = vmax.f32 %v1168_v22, 0.0  ;;  %3265 = vmatprep.mubr.msk.bf16.mxu1 %vm1615_vm0, %v1594_v20  ;;  %3264 = vmatpush3.bf16.msra.mxu1 %v3535_v19 }
 0x370   : > { %v1246_v27 = vpack.c.bf16 %v1218_v24, %v1217_v23  ;;  %3281 = vmatprep.subr.bf16.mxu1 %v3536_v21 }
 0x371   : > { %v1245_v28 = vpack.c.bf16 %v1216_v26, %v1215_v25  ;;  %v4407_v26 = vld [vmem:[%s4761_s6] ss:$0 sm:$0xff] }
 0x372   : > { %v1596_v22 = vpop.permute.xlu0 %1595 }
 0x373   : > { %3251 = vmatprep.mubr.bf16.mxu0 %v1245_v28  ;;  %3266 = vmatmul.mubr.msk.bf16.vlgmr.msra.gmra.mrb[32].mxu1 %vm1615_vm0, %v1596_v22 }
 0x374   : > { %3252 = vmatmul.mubr.bf16.gmra.mrb[36].mxu0 %v1246_v27  ;;  %3282 = vmatpush3.bf16.msra.mxu1 %v3536_v21 }
 0x379   : > { %v3225_v29 = vpop.f32.mrb[24].mxu1 }
 0x37a   : > { %v1189_v30 = vadd.f32 %v3225_v29, %v1065_v61  ;;  %v1180_v31 = vpop.f32.mrb[25].mxu1 }
 0x37b   : > { %v1181_v32 = vadd.f32 %v1180_v31, %v1065_v61  ;;  %v3226_v33 = vpop.f32.mrb[26].mxu1 }
 0x37c   : > { %v1192_v34 = vadd.f32 %v3226_v33, %v1065_v61  ;;  %v1183_v35 = vpop.f32.mrb[27].mxu1  ;;  %v1221_v37 = vmax.f32 %v1189_v30, 0.0 }
 0x37d   : > { %v1184_v36 = vadd.f32 %v1183_v35, %v1065_v61  ;;  %v1219_v39 = vmax.f32 %v1181_v32, 0.0 }
 0x37e   : > { %v1222_v38 = vmax.f32 %v1192_v34, 0.0 }
 0x37f   : > { %v1220_v40 = vmax.f32 %v1184_v36, 0.0 }
 0x380   : > { %v1248_v41 = vpack.c.bf16 %v1222_v38, %v1221_v37 }
 0x381   : > { %v1247_v42 = vpack.c.bf16 %v1220_v40, %v1219_v39 }
 0x383   : > { %3255 = vmatprep.mubr.bf16.mxu0 %v1247_v42 }
 0x384   : > { %3256 = vmatmul.mubr.bf16.gmra.mrb[40].mxu0 %v1248_v41 }
 0x389   : > { %v3229_v43 = vpop.f32.mrb[28].mxu1 }
 0x38a   : > { %v1205_v44 = vadd.f32 %v3229_v43, %v1065_v61  ;;  %v1196_v45 = vpop.f32.mrb[29].mxu1 }
 0x38b   : > { %v1197_v46 = vadd.f32 %v1196_v45, %v1065_v61  ;;  %v3230_v47 = vpop.f32.mrb[30].mxu1 }
 0x38c   : > { %v1208_v48 = vadd.f32 %v3230_v47, %v1065_v61  ;;  %v1199_v49 = vpop.f32.mrb[31].mxu1  ;;  %v1225_v14 = vmax.f32 %v1205_v44, 0.0 }
 0x38d   : > { %v1200_v50 = vadd.f32 %v1199_v49, %v1065_v61  ;;  %v1223_v52 = vmax.f32 %v1197_v46, 0.0  ;;  %v1579_v61 = vpack.c.bf16 %v4350_v0, %v4347_v63  ;;  %v3537_v46 = vld [vmem:[#allocation5 + $0x8] sm:$0xff]  }
 0x38e   : > { %v1226_v51 = vmax.f32 %v1208_v48, 0.0  ;;  %3283 = vmatprep.subr.bf16.mxu1 %v3537_v46 }
 0x38f   : > { %v1224_v57 = vmax.f32 %v1200_v50, 0.0  ;;  %1597 = vrot.lane.b32.xlu1 %v1579_v61, %s3899_s25  ;;  %3284 = vmatpush3.bf16.msra.mxu1 %v3537_v46 }
 0x390   : > { %v1250_v59 = vpack.c.bf16 %v1226_v51, %v1225_v14 }
 0x391   : > { %v1249_v62 = vpack.c.bf16 %v1224_v57, %v1223_v52 }
 0x393   : > { %3259 = vmatprep.mubr.bf16.mxu0 %v1249_v62  ;;  %1599 = vrot.lane.b32.xlu1 %v1580_v3, %s3899_s25 }
 0x394   : > { %3260 = vmatmul.mubr.bf16.gmra.mrb[44].mxu0 %v1250_v59 }
 0x397   : > { %1603 = vrot.lane.b32.xlu1 %v1582_v13, %s3899_s25 }
 0x39b   : > { %1607 = vrot.lane.b32.xlu1 %v1584_v12, %s3899_s25 }
 0x3d4   : > { %v1602_v25 = vpop.permute.xlu0 %1601 }
 0x3de   : > { %v1606_v33 = vpop.permute.xlu0 %1605 }
 0x401   : > { %v1598_v23 = vpop.permute.xlu1 %1597 }
 0x402   : > { %3269 = vmatprep.mubr.msk.bf16.mxu1 %vm1615_vm0, %v1598_v23 }
 0x405   : > { %v1600_v24 = vpop.permute.xlu1 %1599 }
 0x406   : > { %3270 = vmatmul.mubr.msk.bf16.gmra.mrb[36].mxu1 %vm1615_vm0, %v1600_v24 }
 0x407   : > { %3273 = vmatprep.mubr.msk.bf16.mxu1 %vm1615_vm0, %v1602_v25 }
 0x409   : > { %v1604_v30 = vpop.permute.xlu1 %1603 }
 0x40d   : > { %v1608_v44 = vpop.permute.xlu1 %1607 }
 0x40e   : > { %3274 = vmatmul.mubr.msk.bf16.gmra.mrb[40].mxu1 %vm1615_vm0, %v1604_v30 }
 0x40f   : > { %3277 = vmatprep.mubr.msk.bf16.mxu1 %vm1615_vm0, %v1606_v33 }
 0x416   : > { %3278 = vmatmul.mubr.msk.bf16.gmra.mrb[44].mxu1 %vm1615_vm0, %v1608_v44 }
 0x437   : > { %v3249_v27 = vpop.f32.mrb[32].mxu0 }
 0x438   : > { %v4418_v28 = vadd.f32 %v3249_v27, %v4407_v26  ;;  %v1340_v29 = vpop.f32.mrb[33].mxu0 }
 0x439   : > { %v4421_v31 = vadd.f32 %v4407_v26, %v1340_v29  ;;  %v3250_v32 = vpop.f32.mrb[34].mxu0 }
 0x43a   : > { %2662 = vst.msk [vmem:[%s4415_s14 + $0x10] sm:$0xff] %vm2659_vm1, %v4418_v28  ;;  %v4428_v34 = vadd.f32 %v3250_v32, %v4407_v26  ;;  %v1343_v35 = vpop.f32.mrb[35].mxu0  ;;  %v1421_v36 = vmul.f32 0.5, %v4418_v28 }
 0x43b   : > { %v1419_v37 = vmul.f32 0.5, %v4421_v31  ;;  %2660 = vst.msk [vmem:[%s4415_s14] sm:$0xff] %vm2659_vm1, %v4421_v31  ;;  %v4437_v38 = vadd.f32 %v4407_v26, %v1343_v35 }
 0x43c   : > { %2663 = vst.msk [vmem:[%s4415_s14 + $0x18] sm:$0xff] %vm2659_vm1, %v4428_v34  ;;  %v1422_v40 = vmul.f32 0.5, %v4428_v34  ;;  %v1439_v42 = vmul.f32 1.442695, %v1421_v36 }
 0x43d   : > { %v1435_v39 = vmul.f32 1.442695, %v1419_v37  ;;  %v1420_v41 = vmul.f32 0.5, %v4437_v38  ;;  %2661 = vst.msk [vmem:[%s4415_s14 + $0x8] sm:$0xff] %vm2659_vm1, %v4437_v38 }
 0x43e   : > { %v1441_v45 = vmul.f32 1.442695, %v1422_v40 }
 0x43f   : > { %3578 = vpow2.f32 %v1435_v39  ;;  %v1437_v43 = vmul.f32 1.442695, %v1420_v41 }
 0x441   : > { %3580 = vpow2.f32 %v1437_v43 }
 0x442   : > { %3582 = vpow2.f32 %v1439_v42 }
 0x443   : > { %3584 = vpow2.f32 %v1441_v45 }
 0x447   : > { %v3253_v47 = vpop.f32.mrb[36].mxu0 }
 0x448   : > { %v4449_v48 = vadd.f32 %v3253_v47, %v4407_v26  ;;  %v1356_v49 = vpop.f32.mrb[37].mxu0 }
 0x449   : > { %v3579_v50 = vpop.eup %3578  ;;  %v4452_v14 = vadd.f32 %v4407_v26, %v1356_v49  ;;  %v3254_v51 = vpop.f32.mrb[38].mxu0 }
 0x44a   : > { %2666 = vst.msk [vmem:[%s4415_s14 + $0x30] sm:$0xff] %vm2659_vm1, %v4449_v48  ;;  %v4458_v52 = vadd.f32 %v3254_v51, %v4407_v26  ;;  %v1359_v57 = vpop.f32.mrb[39].mxu0  ;;  %1483 = vrot.lane.b32.xlu0 %v3579_v50, %s3899_s25  ;;  %v1425_v62 = vmul.f32 0.5, %v4449_v48 }
 0x44b   : > { %v3581_v59 = vpop.eup %3580  ;;  %v1423_v61 = vmul.f32 0.5, %v4452_v14  ;;  %2664 = vst.msk [vmem:[%s4415_s14 + $0x20] sm:$0xff] %vm2659_vm1, %v4452_v14  ;;  %v4467_v3 = vadd.f32 %v4407_v26, %v1359_v57 }
 0x44c   : > { %2667 = vst.msk [vmem:[%s4415_s14 + $0x38] sm:$0xff] %vm2659_vm1, %v4458_v52  ;;  %1485 = vrot.lane.b32.xlu1 %v3581_v59, %s3899_s25  ;;  %v3583_v6 = vpop.eup %3582  ;;  %v1426_v16 = vmul.f32 0.5, %v4458_v52  ;;  %v1447_v20 = vmul.f32 1.442695, %v1425_v62 }
 0x44d   : > { %v1443_v13 = vmul.f32 1.442695, %v1423_v61  ;;  %v1424_v12 = vmul.f32 0.5, %v4467_v3  ;;  %2665 = vst.msk [vmem:[%s4415_s14 + $0x28] sm:$0xff] %vm2659_vm1, %v4467_v3  ;;  %v3585_v19 = vpop.eup %3584 }
 0x44e   : > { %1487 = vrot.lane.b32.xlu0 %v3583_v6, %s3899_s25  ;;  %v1449_v22 = vmul.f32 1.442695, %v1426_v16 }
 0x44f   : > { %3586 = vpow2.f32 %v1443_v13  ;;  %v1445_v21 = vmul.f32 1.442695, %v1424_v12 }
 0x450   : > { %1489 = vrot.lane.b32.xlu1 %v3585_v19, %s3899_s25 }
 0x451   : > { %3588 = vpow2.f32 %v1445_v21 }
 0x452   : > { %3590 = vpow2.f32 %v1447_v20 }
 0x453   : > { %3592 = vpow2.f32 %v1449_v22 }
 0x457   : > { %v3257_v23 = vpop.f32.mrb[40].mxu0 }
 0x458   : > { %v4481_v24 = vadd.f32 %v3257_v23, %v4407_v26  ;;  %v1372_v25 = vpop.f32.mrb[41].mxu0 }
 0x459   : > { %v3587_v27 = vpop.eup %3586  ;;  %v4484_v29 = vadd.f32 %v4407_v26, %v1372_v25  ;;  %v3258_v30 = vpop.f32.mrb[42].mxu0 }
 0x45a   : > { %2670 = vst.msk [vmem:[%s4415_s14 + $0x50] sm:$0xff] %vm2659_vm1, %v4481_v24  ;;  %v4490_v32 = vadd.f32 %v3258_v30, %v4407_v26  ;;  %v1375_v33 = vpop.f32.mrb[43].mxu0  ;;  %1491 = vrot.lane.b32.xlu0 %v3587_v27, %s3899_s25  ;;  %v1429_v36 = vmul.f32 0.5, %v4481_v24 }
 0x45b   : > { %v3589_v35 = vpop.eup %3588  ;;  %v1427_v37 = vmul.f32 0.5, %v4484_v29  ;;  %2668 = vst.msk [vmem:[%s4415_s14 + $0x40] sm:$0xff] %vm2659_vm1, %v4484_v29  ;;  %v4499_v39 = vadd.f32 %v4407_v26, %v1375_v33 }
 0x45c   : > { %2671 = vst.msk [vmem:[%s4415_s14 + $0x58] sm:$0xff] %vm2659_vm1, %v4490_v32  ;;  %1493 = vrot.lane.b32.xlu1 %v3589_v35, %s3899_s25  ;;  %v3591_v40 = vpop.eup %3590  ;;  %v1430_v42 = vmul.f32 0.5, %v4490_v32  ;;  %v1455_v45 = vmul.f32 1.442695, %v1429_v36  ;;  %v3538_v35 = vld [vmem:[#allocation7] sm:$0xff]   ;;  %v3539_v36 = vld [vmem:[#allocation7 + $0x8] sm:$0xff]  }
 0x45d   : > { %v1451_v41 = vmul.f32 1.442695, %v1427_v37  ;;  %v1428_v43 = vmul.f32 0.5, %v4499_v39  ;;  %2669 = vst.msk [vmem:[%s4415_s14 + $0x48] sm:$0xff] %vm2659_vm1, %v4499_v39  ;;  %v3593_v44 = vpop.eup %3592  ;;  %3301 = vmatprep.subr.bf16.mxu0 %v3538_v35 }
 0x45e   : > { %1495 = vrot.lane.b32.xlu0 %v3591_v40, %s3899_s25  ;;  %v1457_v47 = vmul.f32 1.442695, %v1430_v42  ;;  %3302 = vmatpush3.bf16.msra.mxu0 %v3538_v35 }
 0x45f   : > { %3594 = vpow2.f32 %v1451_v41  ;;  %v1453_v46 = vmul.f32 1.442695, %v1428_v43  ;;  %3303 = vmatprep.subr.bf16.mxu0 %v3539_v36  ;;  %v3540_v41 = vld [vmem:[#allocation7 + $0x10] sm:$0xff]   ;;  %v3541_v43 = vld [vmem:[#allocation7 + $0x18] sm:$0xff]  }
 0x460   : > { %1497 = vrot.lane.b32.xlu1 %v3593_v44, %s3899_s25  ;;  %v3542_v44 = vld [vmem:[#allocation7 + $0x20] sm:$0xff]  }
 0x461   : > { %3596 = vpow2.f32 %v1453_v46 }
 0x462   : > { %3598 = vpow2.f32 %v1455_v45  ;;  %3304 = vmatpush3.bf16.msra.mxu0 %v3539_v36  ;;  %v3543_v45 = vld [vmem:[#allocation7 + $0x28] sm:$0xff]  }
 0x463   : > { %3600 = vpow2.f32 %v1457_v47  ;;  %3305 = vmatprep.subr.bf16.mxu0 %v3540_v41 }
 0x466   : > { %3306 = vmatpush3.bf16.msra.mxu0 %v3540_v41 }
 0x467   : > { %v3261_v49 = vpop.f32.mrb[44].mxu0  ;;  %3307 = vmatprep.subr.bf16.mxu0 %v3541_v43 }
 0x468   : > { %v4513_v50 = vadd.f32 %v3261_v49, %v4407_v26  ;;  %v1388_v51 = vpop.f32.mrb[45].mxu0 }
 0x469   : > { %v3595_v57 = vpop.eup %3594  ;;  %v4516_v59 = vadd.f32 %v4407_v26, %v1388_v51  ;;  %v3262_v62 = vpop.f32.mrb[46].mxu0 }
 0x46a   : > { %2674 = vst.msk [vmem:[%s4415_s14 + $0x70] sm:$0xff] %vm2659_vm1, %v4513_v50  ;;  %v4522_v61 = vadd.f32 %v3262_v62, %v4407_v26  ;;  %v1391_v6 = vpop.f32.mrb[47].mxu0  ;;  %1499 = vrot.lane.b32.xlu0 %v3595_v57, %s3899_s25  ;;  %v1433_v16 = vmul.f32 0.5, %v4513_v50  ;;  %3308 = vmatpush3.bf16.msra.mxu0 %v3541_v43 }
 0x46b   : > { %v3597_v13 = vpop.eup %3596  ;;  %v1431_v12 = vmul.f32 0.5, %v4516_v59  ;;  %2672 = vst.msk [vmem:[%s4415_s14 + $0x60] sm:$0xff] %vm2659_vm1, %v4516_v59  ;;  %v4531_v19 = vadd.f32 %v4407_v26, %v1391_v6  ;;  %3309 = vmatprep.subr.bf16.mxu0 %v3542_v44 }
 0x46c   : > { %2675 = vst.msk [vmem:[%s4415_s14 + $0x78] sm:$0xff] %vm2659_vm1, %v4522_v61  ;;  %1501 = vrot.lane.b32.xlu1 %v3597_v13, %s3899_s25  ;;  %v3599_v20 = vpop.eup %3598  ;;  %v1434_v22 = vmul.f32 0.5, %v4522_v61  ;;  %v1463_v27 = vmul.f32 1.442695, %v1433_v16 }
 0x46d   : > { %v1459_v21 = vmul.f32 1.442695, %v1431_v12  ;;  %v1432_v23 = vmul.f32 0.5, %v4531_v19  ;;  %2673 = vst.msk [vmem:[%s4415_s14 + $0x68] sm:$0xff] %vm2659_vm1, %v4531_v19  ;;  %v3601_v25 = vpop.eup %3600 }
 0x46e   : > { %1503 = vrot.lane.b32.xlu0 %v3599_v20, %s3899_s25  ;;  %v1465_v30 = vmul.f32 1.442695, %v1434_v22  ;;  %3310 = vmatpush3.bf16.msra.mxu0 %v3542_v44 }
 0x46f   : > { %3602 = vpow2.f32 %v1459_v21  ;;  %v1461_v26 = vmul.f32 1.442695, %v1432_v23  ;;  %3311 = vmatprep.subr.bf16.mxu0 %v3543_v45 }
 0x470   : > { %1505 = vrot.lane.b32.xlu1 %v3601_v25, %s3899_s25 }
 0x471   : > { %3604 = vpow2.f32 %v1461_v26 }
 0x472   : > { %3606 = vpow2.f32 %v1463_v27  ;;  %3312 = vmatpush3.bf16.msra.mxu0 %v3543_v45 }
 0x473   : > { %3608 = vpow2.f32 %v1465_v30 }
 0x479   : > { %v3603_v33 = vpop.eup %3602 }
 0x47a   : > { %1507 = vrot.lane.b32.xlu0 %v3603_v33, %s3899_s25 }
 0x47b   : > { %v3605_v37 = vpop.eup %3604 }
 0x47c   : > { %1509 = vrot.lane.b32.xlu1 %v3605_v37, %s3899_s25  ;;  %v3607_v40 = vpop.eup %3606 }
 0x47d   : > { %v3609_v42 = vpop.eup %3608 }
 0x47e   : > { %1511 = vrot.lane.b32.xlu0 %v3607_v40, %s3899_s25 }
 0x480   : > { %1513 = vrot.lane.b32.xlu1 %v3609_v42, %s3899_s25  ;;  %s4706_s25 = scalar_lea.hbm %s4810_s22, %s3003_s18 }
 0x4bc   : > { %v1484_v46 = vpop.permute.xlu0 %1483 }
 0x4bd   : > { %v1531_v47 = vmul.f32 %v1484_v46, %v4325_v53 }
 0x4be   : > { %v1486_v49 = vpop.permute.xlu1 %1485 }
 0x4bf   : > { %v1532_v51 = vmul.f32 %v1486_v49, %v4328_v55  ;;  %v1547_v62 = vadd.f32 %v1531_v47, %v4421_v31 }
 0x4c0   : > { %v1488_v57 = vpop.permute.xlu0 %1487 }
 0x4c1   : > { %v1548_v6 = vadd.f32 %v1532_v51, %v4437_v38  ;;  %v1533_v13 = vmul.f32 %v1488_v57, %v4331_v56 }
 0x4c2   : > { %v1490_v16 = vpop.permute.xlu1 %1489 }
 0x4c3   : > { %v1567_v12 = vpack.c.bf16 %v1548_v6, %v1547_v62  ;;  %v1534_v20 = vmul.f32 %v1490_v16, %v4336_v58  ;;  %v1549_v21 = vadd.f32 %v1533_v13, %v4418_v28 }
 0x4c5   : > { %v1550_v22 = vadd.f32 %v1534_v20, %v4428_v34  ;;  %3285 = vmatprep.mubr.msk.bf16.mxu1 %vm1749_vm2, %v1567_v12 }
 0x4c7   : > { %v1568_v53 = vpack.c.bf16 %v1550_v22, %v1549_v21 }
 0x4c9   : > { %3286 = vmatmul.mubr.msk.bf16.vlgmr.msra.gmra.mrb[32].mxu1 %vm1749_vm2, %v1568_v53 }
 0x4cc   : > { %v1492_v55 = vpop.permute.xlu0 %1491 }
 0x4cd   : > { %v1535_v31 = vmul.f32 %v1492_v55, %v4347_v63 }
 0x4ce   : > { %v1494_v38 = vpop.permute.xlu1 %1493 }
 0x4cf   : > { %v1536_v56 = vmul.f32 %v1494_v38, %v4350_v0  ;;  %v1551_v25 = vadd.f32 %v1535_v31, %v4452_v14  ;;  %v3547_v31 = vld [vmem:[#allocation7 + $0x48] sm:$0xff]   ;;  %v3548_v38 = vld [vmem:[#allocation7 + $0x50] sm:$0xff]  }
 0x4d0   : > { %v1496_v23 = vpop.permute.xlu0 %1495 }
 0x4d1   : > { %v1552_v58 = vadd.f32 %v1536_v56, %v4467_v3  ;;  %v1537_v28 = vmul.f32 %v1496_v23, %v4356_v1 }
 0x4d2   : > { %v1498_v27 = vpop.permute.xlu1 %1497 }
 0x4d3   : > { %v1569_v34 = vpack.c.bf16 %v1552_v58, %v1551_v25  ;;  %v1538_v26 = vmul.f32 %v1498_v27, %v4359_v2  ;;  %v1553_v30 = vadd.f32 %v1537_v28, %v4449_v48  ;;  %v3549_v58 = vld [vmem:[#allocation7 + $0x58] sm:$0xff]  }
 0x4d5   : > { %v1554_v33 = vadd.f32 %v1538_v26, %v4458_v52  ;;  %3289 = vmatprep.mubr.msk.bf16.mxu1 %vm1749_vm2, %v1569_v34 }
 0x4d7   : > { %v1570_v63 = vpack.c.bf16 %v1554_v33, %v1553_v30 }
 0x4d9   : > { %3290 = vmatmul.mubr.msk.bf16.gmra.mrb[36].mxu1 %vm1749_vm2, %v1570_v63 }
 0x4dc   : > { %v1500_v0 = vpop.permute.xlu0 %1499 }
 0x4dd   : > { %v1539_v14 = vmul.f32 %v1500_v0, %v4365_v4  ;;  %v3550_v0 = vld [vmem:[#allocation7 + $0x60] sm:$0xff]  }
 0x4de   : > { %v1502_v35 = vpop.permute.xlu1 %1501 }
 0x4df   : > { %v1540_v3 = vmul.f32 %v1502_v35, %v4368_v5  ;;  %v1555_v36 = vadd.f32 %v1539_v14, %v4484_v29 }
 0x4e0   : > { %v1504_v1 = vpop.permute.xlu0 %1503 }
 0x4e1   : > { %v1556_v2 = vadd.f32 %v1540_v3, %v4499_v39  ;;  %v1541_v48 = vmul.f32 %v1504_v1, %v4373_v7 }
 0x4e2   : > { %v1506_v37 = vpop.permute.xlu1 %1505 }
 0x4e3   : > { %v1571_v52 = vpack.c.bf16 %v1556_v2, %v1555_v36  ;;  %v1542_v40 = vmul.f32 %v1506_v37, %v4376_v8  ;;  %v1557_v41 = vadd.f32 %v1541_v48, %v4481_v24  ;;  %v3551_v36 = vld [vmem:[#allocation7 + $0x68] sm:$0xff]  }
 0x4e5   : > { %v1558_v42 = vadd.f32 %v1542_v40, %v4490_v32  ;;  %3293 = vmatprep.mubr.msk.bf16.mxu1 %vm1749_vm2, %v1571_v52 }
 0x4e7   : > { %v1572_v4 = vpack.c.bf16 %v1558_v42, %v1557_v41 }
 0x4e9   : > { %3294 = vmatmul.mubr.msk.bf16.gmra.mrb[40].mxu1 %vm1749_vm2, %v1572_v4 }
 0x4ec   : > { %v1508_v5 = vpop.permute.xlu0 %1507 }
 0x4ed   : > { %v1543_v29 = vmul.f32 %v1508_v5, %v4379_v9 }
 0x4ee   : > { %v1510_v43 = vpop.permute.xlu1 %1509 }
 0x4ef   : > { %v1544_v39 = vmul.f32 %v1510_v43, %v4385_v15  ;;  %v1559_v44 = vadd.f32 %v1543_v29, %v4516_v59  ;;  %v3544_v15 = vld [vmem:[#allocation7 + $0x30] sm:$0xff]   ;;  %v3545_v59 = vld [vmem:[#allocation7 + $0x38] sm:$0xff]  }
 0x4f0   : > { %v1512_v7 = vpop.permute.xlu0 %1511  ;;  %3313 = vmatprep.subr.bf16.mxu0 %v3544_v15 }
 0x4f1   : > { %v1560_v8 = vadd.f32 %v1544_v39, %v4531_v19  ;;  %v1545_v24 = vmul.f32 %v1512_v7, %v4391_v17  ;;  %3314 = vmatpush3.bf16.msra.mxu0 %v3544_v15  ;;  %v3546_v17 = vld [vmem:[#allocation7 + $0x40] sm:$0xff]  }
 0x4f2   : > { %v1514_v45 = vpop.permute.xlu1 %1513  ;;  %3315 = vmatprep.subr.bf16.mxu0 %v3545_v59 }
 0x4f3   : > { %v1573_v32 = vpack.c.bf16 %v1560_v8, %v1559_v44  ;;  %v1546_v46 = vmul.f32 %v1514_v45, %v4394_v18  ;;  %v1561_v47 = vadd.f32 %v1545_v24, %v4513_v50  ;;  %v4591_v18 = vld [vmem:[%s4765_s10] sm:$0x7] }
 0x4f4   : > { %v4595_v50 = vrot.slane %v4591_v18, %v4260_v11 }
 0x4f5   : > { %v1562_v49 = vadd.f32 %v1546_v46, %v4522_v61  ;;  %3297 = vmatprep.mubr.msk.bf16.mxu1 %vm1749_vm2, %v1573_v32  ;;  %3316 = vmatpush3.bf16.msra.mxu0 %v3545_v59 }
 0x4f6   : > { %3333 = vmatprep.subr.bf16.mxu0 %v3546_v17 }
 0x4f7   : > { %v1574_v9 = vpack.c.bf16 %v1562_v49, %v1561_v47 }
 0x4f9   : > { %3298 = vmatmul.mubr.msk.bf16.gmra.mrb[44].mxu1 %vm1749_vm2, %v1574_v9 }
 0x59c   : > { %v3287_v61 = vpop.f32.mrb[32].mxu1 }
 0x59d   : > { %v1877_v19 = vadd.f32 %v3287_v61, %v4595_v50  ;;  %v1808_v51 = vpop.f32.mrb[33].mxu1 }
 0x59e   : > { %v1875_v57 = vadd.f32 %v4595_v50, %v1808_v51  ;;  %v3288_v62 = vpop.f32.mrb[34].mxu1 }
 0x59f   : > { %v1878_v6 = vadd.f32 %v3288_v62, %v4595_v50  ;;  %v1811_v13 = vpop.f32.mrb[35].mxu1  ;;  %v1893_v12 = vmax.f32 %v1877_v19, 0.0  ;;  %v3553_v62 = vld [vmem:[#allocation7 + $0x78] sm:$0xff]  }
 0x5a0   : > { %v1876_v16 = vadd.f32 %v4595_v50, %v1811_v13  ;;  %v1891_v21 = vmax.f32 %v1875_v57, 0.0  ;;  %v3552_v57 = vld [vmem:[#allocation7 + $0x70] sm:$0xff]   ;;  %v3554_v13 = vld [vmem:[#allocation8] ss:$8 sps:$4 sm:$0xff]  }
 0x5a1   : > { %v1894_v20 = vmax.f32 %v1878_v6, 0.0  ;;  %v3556_v6 = vld [vmem:[#allocation8 + $0x4] ss:$8 sps:$4 sm:$0xff]  }
 0x5a2   : > { %v1892_v22 = vmax.f32 %v1876_v16, 0.0  ;;  %v3559_v16 = vld [vmem:[#allocation8 + $0x14] ss:$8 sps:$4 sm:$0xff]   ;;  %3365 = vmatprep.subr.bf16.mxu1 %v3556_v6 }
 0x5a3   : > { %v1924_v53 = vpack.c.bf16 %v1894_v20, %v1893_v12  ;;  %3373 = vmatpush1.bf16.msra.mxu1 %v3554_v13  ;;  %v3562_v12 = vld [vmem:[#allocation8 + $0x24] ss:$8 sps:$4 sm:$0xff]   ;;  %v3560_v20 = vld [vmem:[#allocation8 + $0x20] ss:$8 sps:$4 sm:$0xff]  }
 0x5a4   : > { %v1923_v55 = vpack.c.bf16 %v1892_v22, %v1891_v21  ;;  %3366 = vmatprep.subr.bf16.mxu1 %v3559_v16  ;;  %v3565_v21 = vld [vmem:[#allocation8 + $0x34] ss:$8 sps:$4 sm:$0xff]   ;;  %v3563_v22 = vld [vmem:[#allocation8 + $0x30] ss:$8 sps:$4 sm:$0xff]  }
 0x5a6   : > { %3317 = vmatprep.mubr.bf16.mxu0 %v1923_v55  ;;  %v3566_v55 = vld [vmem:[#allocation8 + $0x40] ss:$8 sps:$4 sm:$0xff]  }
 0x5a7   : > { %3318 = vmatmul.mubr.bf16.vlgmr.msra.gmra.mrb[48].mxu0 %v1924_v53  ;;  %v3568_v53 = vld [vmem:[#allocation8 + $0x44] ss:$8 sps:$4 sm:$0xff]  }
 0x5a8   : > { %3334 = vmatpush3.bf16.msra.mxu0 %v3546_v17 }
 0x5a9   : > { %3335 = vmatprep.subr.bf16.mxu0 %v3547_v31 }
 0x5ac   : > { %v3291_v56 = vpop.f32.mrb[36].mxu1  ;;  %3336 = vmatpush3.bf16.msra.mxu0 %v3547_v31  ;;  %v3571_v31 = vld [vmem:[#allocation8 + $0x54] ss:$8 sps:$4 sm:$0xff]  }
 0x5ad   : > { %v1881_v23 = vadd.f32 %v3291_v56, %v4595_v50  ;;  %v1824_v25 = vpop.f32.mrb[37].mxu1  ;;  %3337 = vmatprep.subr.bf16.mxu0 %v3548_v38  ;;  %v4615_v56 = vrot.slane %v4591_v18, %v4306_v54 }
 0x5ae   : > { %v1879_v28 = vadd.f32 %v4595_v50, %v1824_v25  ;;  %v3292_v27 = vpop.f32.mrb[38].mxu1 }
 0x5af   : > { %v1882_v34 = vadd.f32 %v3292_v27, %v4595_v50  ;;  %v1827_v26 = vpop.f32.mrb[39].mxu1  ;;  %v1897_v33 = vmax.f32 %v1881_v23, 0.0 }
 0x5b0   : > { %v1880_v30 = vadd.f32 %v4595_v50, %v1827_v26  ;;  %3338 = vmatpush3.bf16.msra.mxu0 %v3548_v38  ;;  %v1895_v14 = vmax.f32 %v1879_v28, 0.0  ;;  %v3569_v38 = vld [vmem:[#allocation8 + $0x50] ss:$8 sps:$4 sm:$0xff]  }
 0x5b1   : > { %v1898_v63 = vmax.f32 %v1882_v34, 0.0  ;;  %3339 = vmatprep.subr.bf16.mxu0 %v3549_v58 }
 0x5b2   : > { %v1896_v35 = vmax.f32 %v1880_v30, 0.0 }
 0x5b3   : > { %v1926_v3 = vpack.c.bf16 %v1898_v63, %v1897_v33 }
 0x5b4   : > { %v1925_v1 = vpack.c.bf16 %v1896_v35, %v1895_v14  ;;  %3340 = vmatpush3.bf16.msra.mxu0 %v3549_v58 }
 0x5b5   : > { %3341 = vmatprep.subr.bf16.mxu0 %v3550_v0 }
 0x5b6   : > { %3321 = vmatprep.mubr.bf16.mxu0 %v1925_v1 }
 0x5b7   : > { %3322 = vmatmul.mubr.bf16.gmra.mrb[52].mxu0 %v1926_v3 }
 0x5b8   : > { %3342 = vmatpush3.bf16.msra.mxu0 %v3550_v0 }
 0x5b9   : > { %3343 = vmatprep.subr.bf16.mxu0 %v3551_v36 }
 0x5bc   : > { %v3295_v2 = vpop.f32.mrb[40].mxu1  ;;  %3344 = vmatpush3.bf16.msra.mxu0 %v3551_v36 }
 0x5bd   : > { %v1885_v48 = vadd.f32 %v3295_v2, %v4595_v50  ;;  %v1840_v37 = vpop.f32.mrb[41].mxu1  ;;  %3345 = vmatprep.subr.bf16.mxu0 %v3552_v57 }
 0x5be   : > { %v1883_v52 = vadd.f32 %v4595_v50, %v1840_v37  ;;  %v3296_v40 = vpop.f32.mrb[42].mxu1 }
 0x5bf   : > { %v1886_v41 = vadd.f32 %v3296_v40, %v4595_v50  ;;  %v1843_v42 = vpop.f32.mrb[43].mxu1  ;;  %v1901_v5 = vmax.f32 %v1885_v48, 0.0 }
 0x5c0   : > { %v1884_v4 = vadd.f32 %v4595_v50, %v1843_v42  ;;  %v1899_v43 = vmax.f32 %v1883_v52, 0.0  ;;  %3346 = vmatpush3.bf16.msra.mxu0 %v3552_v57 }
 0x5c1   : > { %v1902_v29 = vmax.f32 %v1886_v41, 0.0  ;;  %3347 = vmatprep.subr.bf16.mxu0 %v3553_v62 }
 0x5c2   : > { %v1900_v39 = vmax.f32 %v1884_v4, 0.0 }
 0x5c3   : > { %v1928_v7 = vpack.c.bf16 %v1902_v29, %v1901_v5 }
 0x5c4   : > { %v1927_v44 = vpack.c.bf16 %v1900_v39, %v1899_v43  ;;  %3348 = vmatpush3.bf16.msra.mxu0 %v3553_v62 }
 0x5c5   : > { %2402 = vmatprep.subr.bf16.mxu0 %v3556_v6 }
 0x5c6   : > { %3325 = vmatprep.mubr.bf16.mxu0 %v1927_v44 }
 0x5c7   : > { %3326 = vmatmul.mubr.bf16.gmra.mrb[56].mxu0 %v1928_v7 }
 0x5cc   : > { %v3299_v8 = vpop.f32.mrb[44].mxu1 }
 0x5cd   : > { %v1889_v24 = vadd.f32 %v3299_v8, %v4595_v50  ;;  %v1856_v45 = vpop.f32.mrb[45].mxu1 }
 0x5ce   : > { %v1887_v32 = vadd.f32 %v4595_v50, %v1856_v45  ;;  %v3300_v46 = vpop.f32.mrb[46].mxu1 }
 0x5cf   : > { %v1890_v47 = vadd.f32 %v3300_v46, %v4595_v50  ;;  %v1859_v49 = vpop.f32.mrb[47].mxu1  ;;  %v1905_v15 = vmax.f32 %v1889_v24, 0.0 }
 0x5d0   : > { %v1888_v9 = vadd.f32 %v4595_v50, %v1859_v49  ;;  %v1903_v17 = vmax.f32 %v1887_v32, 0.0  ;;  %v3557_v50 = vld [vmem:[#allocation8 + $0x10] ss:$8 sps:$4 sm:$0xff]  }
 0x5d1   : > { %v1906_v59 = vmax.f32 %v1890_v47, 0.0  ;;  %3374 = vmatpush1.bf16.msra.mxu1 %v3557_v50 }
 0x5d2   : > { %v1904_v61 = vmax.f32 %v1888_v9, 0.0  ;;  %3367 = vmatprep.subr.bf16.mxu1 %v3562_v12 }
 0x5d3   : > { %v1930_v19 = vpack.c.bf16 %v1906_v59, %v1905_v15 }
 0x5d4   : > { %v1929_v51 = vpack.c.bf16 %v1904_v61, %v1903_v17 }
 0x5d5   : > { %3375 = vmatpush1.bf16.msra.mxu1 %v3560_v20 }
 0x5d6   : > { %3329 = vmatprep.mubr.bf16.mxu0 %v1929_v51  ;;  %3368 = vmatprep.subr.bf16.mxu1 %v3565_v21 }
 0x5d7   : > { %3330 = vmatmul.mubr.bf16.gmra.mrb[60].mxu0 %v1930_v19 }
 0x5d9   : > { %3376 = vmatpush1.bf16.msra.mxu1 %v3563_v22 }
 0x5da   : > { %3369 = vmatprep.subr.bf16.mxu1 %v3568_v53 }
 0x5dd   : > { %3377 = vmatpush1.bf16.msra.mxu1 %v3566_v55 }
 0x5de   : > { %3370 = vmatprep.subr.bf16.mxu1 %v3571_v31 }
 0x5e1   : > { %3378 = vmatpush1.bf16.msra.mxu1 %v3569_v38 }
 0x67a   : > { %v3319_v23 = vpop.f32.mrb[48].mxu0 }
 0x67b   : > { %v2026_v25 = vadd.f32 %v3319_v23, %v4615_v56  ;;  %v2017_v58 = vpop.f32.mrb[49].mxu0  ;;  %v3577_v23 = vld [vmem:[#allocation8 + $0x74] ss:$8 sps:$4 sm:$0xff]  }
 0x67c   : > { %v2018_v28 = vadd.f32 %v2017_v58, %v4615_v56  ;;  %v3320_v27 = vpop.f32.mrb[50].mxu0  ;;  %v2124_v58 = vrot.slane %v4591_v18, %v1064_v60 }
 0x67d   : > { %v2029_v34 = vadd.f32 %v3320_v27, %v4615_v56  ;;  %v2020_v26 = vpop.f32.mrb[51].mxu0  ;;  %v2082_v33 = vmax.f32 %v2026_v25, 0.0  ;;  %v3575_v25 = vld [vmem:[#allocation8 + $0x70] ss:$8 sps:$4 sm:$0xff]  }
 0x67e   : > { %v2021_v30 = vadd.f32 %v2020_v26, %v4615_v56  ;;  %v2080_v0 = vmax.f32 %v2018_v28, 0.0 }
 0x67f   : > { %v2083_v63 = vmax.f32 %v2029_v34, 0.0 }
 0x680   : > { %v2081_v14 = vmax.f32 %v2021_v30, 0.0 }
 0x681   : > { %v2114_v35 = vpack.c.bf16 %v2083_v63, %v2082_v33 }
 0x682   : > { %v2113_v3 = vpack.c.bf16 %v2081_v14, %v2080_v0 }
 0x684   : > { %3349 = vmatprep.mubr.bf16.mxu0 %v2113_v3 }
 0x685   : > { %3350 = vmatmul.mubr.bf16.vlgmr.msra.gmra.mrb[64].mxu0 %v2114_v35 }
 0x686   : > { %2403 = vmatpush1.bf16.msra.mxu0 %v3554_v13 }
 0x687   : > { %2404 = vmatprep.subr.bf16.mxu0 %v3559_v16 }
 0x68a   : > { %v3323_v1 = vpop.f32.mrb[52].mxu0  ;;  %2405 = vmatpush1.bf16.msra.mxu0 %v3557_v50 }
 0x68b   : > { %v2042_v36 = vadd.f32 %v3323_v1, %v4615_v56  ;;  %v2033_v2 = vpop.f32.mrb[53].mxu0  ;;  %2406 = vmatprep.subr.bf16.mxu0 %v3562_v12 }
 0x68c   : > { %v2034_v48 = vadd.f32 %v2033_v2, %v4615_v56  ;;  %v3324_v37 = vpop.f32.mrb[54].mxu0 }
 0x68d   : > { %v2045_v52 = vadd.f32 %v3324_v37, %v4615_v56  ;;  %v2036_v40 = vpop.f32.mrb[55].mxu0  ;;  %v2086_v42 = vmax.f32 %v2042_v36, 0.0 }
 0x68e   : > { %v2037_v41 = vadd.f32 %v2036_v40, %v4615_v56  ;;  %2407 = vmatpush1.bf16.msra.mxu0 %v3560_v20  ;;  %v2084_v5 = vmax.f32 %v2034_v48, 0.0 }
 0x68f   : > { %v2087_v4 = vmax.f32 %v2045_v52, 0.0  ;;  %2408 = vmatprep.subr.bf16.mxu0 %v3565_v21 }
 0x690   : > { %v2085_v29 = vmax.f32 %v2037_v41, 0.0 }
 0x691   : > { %v2116_v43 = vpack.c.bf16 %v2087_v4, %v2086_v42 }
 0x692   : > { %v2115_v39 = vpack.c.bf16 %v2085_v29, %v2084_v5  ;;  %2409 = vmatpush1.bf16.msra.mxu0 %v3563_v22 }
 0x693   : > { %2410 = vmatprep.subr.bf16.mxu0 %v3568_v53 }
 0x694   : > { %3353 = vmatprep.mubr.bf16.mxu0 %v2115_v39 }
 0x695   : > { %3354 = vmatmul.mubr.bf16.gmra.mrb[68].mxu0 %v2116_v43 }
 0x696   : > { %2411 = vmatpush1.bf16.msra.mxu0 %v3566_v55 }
 0x697   : > { %2412 = vmatprep.subr.bf16.mxu0 %v3571_v31  ;;  %v3574_v31 = vld [vmem:[#allocation8 + $0x64] ss:$8 sps:$4 sm:$0xff]  }
 0x698   : > { %3371 = vmatprep.subr.bf16.mxu1 %v3574_v31 }
 0x69a   : > { %v3327_v7 = vpop.f32.mrb[56].mxu0  ;;  %2413 = vmatpush1.bf16.msra.mxu0 %v3569_v38  ;;  %v3572_v38 = vld [vmem:[#allocation8 + $0x60] ss:$8 sps:$4 sm:$0xff]  }
 0x69b   : > { %v2058_v44 = vadd.f32 %v3327_v7, %v4615_v56  ;;  %v2049_v8 = vpop.f32.mrb[57].mxu0  ;;  %2414 = vmatprep.subr.bf16.mxu0 %v3574_v31  ;;  %3379 = vmatpush1.bf16.msra.mxu1 %v3572_v38  ;;  %v2310_v31 = vld [vmem:[#allocation10] sm:$0x3] }
 0x69c   : > { %v2050_v24 = vadd.f32 %v2049_v8, %v4615_v56  ;;  %v3328_v45 = vpop.f32.mrb[58].mxu0  ;;  %3372 = vmatprep.subr.bf16.mxu1 %v3577_v23 }
 0x69d   : > { %v2061_v32 = vadd.f32 %v3328_v45, %v4615_v56  ;;  %v2052_v46 = vpop.f32.mrb[59].mxu0  ;;  %v2090_v49 = vmax.f32 %v2058_v44, 0.0 }
 0x69e   : > { %v2053_v47 = vadd.f32 %v2052_v46, %v4615_v56  ;;  %v2088_v15 = vmax.f32 %v2050_v24, 0.0  ;;  %2415 = vmatpush1.bf16.msra.mxu0 %v3572_v38  ;;  %v4645_v38 = vrot.slane %v2310_v31, %v4260_v11 }
 0x69f   : > { %v2091_v9 = vmax.f32 %v2061_v32, 0.0  ;;  %2416 = vmatprep.subr.bf16.mxu0 %v3577_v23  ;;  %3380 = vmatpush1.bf16.msra.mxu1 %v3575_v25  ;;  %v4648_v23 = vrot.slane %v2310_v31, %v4306_v54 }
 0x6a0   : > { %v2089_v59 = vmax.f32 %v2053_v47, 0.0 }
 0x6a1   : > { %v2118_v17 = vpack.c.bf16 %v2091_v9, %v2090_v49 }
 0x6a2   : > { %v2117_v61 = vpack.c.bf16 %v2089_v59, %v2088_v15  ;;  %2417 = vmatpush1.bf16.msra.mxu0 %v3575_v25 }
 0x6a4   : > { %3357 = vmatprep.mubr.bf16.mxu0 %v2117_v61 }
 0x6a5   : > { %3358 = vmatmul.mubr.bf16.gmra.mrb[72].mxu0 %v2118_v17 }
 0x6aa   : > { %v3331_v19 = vpop.f32.mrb[60].mxu0 }
 0x6ab   : > { %v2074_v51 = vadd.f32 %v3331_v19, %v4615_v56  ;;  %v2065_v57 = vpop.f32.mrb[61].mxu0 }
 0x6ac   : > { %v2066_v62 = vadd.f32 %v2065_v57, %v4615_v56  ;;  %v3332_v6 = vpop.f32.mrb[62].mxu0 }
 0x6ad   : > { %v2077_v13 = vadd.f32 %v3332_v6, %v4615_v56  ;;  %v2068_v16 = vpop.f32.mrb[63].mxu0  ;;  %v2094_v12 = vmax.f32 %v2074_v51, 0.0 }
 0x6ae   : > { %v2069_v50 = vadd.f32 %v2068_v16, %v4615_v56  ;;  %v2092_v21 = vmax.f32 %v2066_v62, 0.0  ;;  %v3900_v56 = vmov 0  }
 0x6af   : > { %v2095_v20 = vmax.f32 %v2077_v13, 0.0  ;;  %2454 = vmatprep.mubr.bf16.mxu1 %v3900_v56 }
 0x6b0   : > { %v2093_v22 = vmax.f32 %v2069_v50, 0.0 }
 0x6b1   : > { %v2120_v53 = vpack.c.bf16 %v2095_v20, %v2094_v12 }
 0x6b2   : > { %v2119_v55 = vpack.c.bf16 %v2093_v22, %v2092_v21 }
 0x6b4   : > { %3361 = vmatprep.mubr.bf16.mxu0 %v2119_v55 }
 0x6b5   : > { %3362 = vmatmul.mubr.bf16.gmra.mrb[76].mxu0 %v2120_v53 }
 0x6b6   : > { %2434 = vmatprep.mubr.bf16.mxu0 %v3900_v56 }
 0x758   : > { %v3351_v28 = vpop.f32.mrb[64].mxu0 }
 0x759   : > { %v2216_v27 = vadd.f32 %v3351_v28, %v2124_v58  ;;  %v2207_v34 = vpop.f32.mrb[65].mxu0 }
 0x75a   : > { %v2208_v26 = vadd.f32 %v2207_v34, %v2124_v58  ;;  %v3352_v30 = vpop.f32.mrb[66].mxu0 }
 0x75b   : > { %v2219_v33 = vadd.f32 %v3352_v30, %v2124_v58  ;;  %v2210_v63 = vpop.f32.mrb[67].mxu0  ;;  %v2272_v14 = vmax.f32 %v2216_v27, 0.0 }
 0x75c   : > { %v2211_v0 = vadd.f32 %v2210_v63, %v2124_v58  ;;  %v2270_v3 = vmax.f32 %v2208_v26, 0.0 }
 0x75d   : > { %v2273_v35 = vmax.f32 %v2219_v33, 0.0 }
 0x75e   : > { %v2271_v1 = vmax.f32 %v2211_v0, 0.0 }
 0x75f   : > { %v2303_v36 = vpack.c.bf16 %v2273_v35, %v2272_v14 }
 0x760   : > { %v2302_v2 = vpack.c.bf16 %v2271_v1, %v2270_v3 }
 0x762   : > { %2435 = vmatmul.mubr.bf16.vlgmr.msra.gmra.mrb[80].mxu0 %v2302_v2 }
 0x763   : > { %2444 = vmatprep.mubr.bf16.mxu0 %v3900_v56 }
 0x768   : > { %v3355_v10 = vpop.f32.mrb[68].mxu0 }
 0x769   : > { %v2232_v48 = vadd.f32 %v3355_v10, %v2124_v58  ;;  %v2223_v60 = vpop.f32.mrb[69].mxu0 }
 0x76a   : > { %v2224_v18 = vadd.f32 %v2223_v60, %v2124_v58  ;;  %v3356_v37 = vpop.f32.mrb[70].mxu0  ;;  %2445 = vmatmul.mubr.bf16.gmra.mrb[84].mxu0 %v2303_v36 }
 0x76b   : > { %v2235_v52 = vadd.f32 %v3356_v37, %v2124_v58  ;;  %v2226_v40 = vpop.f32.mrb[71].mxu0  ;;  %v2276_v42 = vmax.f32 %v2232_v48, 0.0 }
 0x76c   : > { %v2227_v41 = vadd.f32 %v2226_v40, %v2124_v58  ;;  %v2274_v5 = vmax.f32 %v2224_v18, 0.0 }
 0x76d   : > { %v2277_v4 = vmax.f32 %v2235_v52, 0.0 }
 0x76e   : > { %v2275_v29 = vmax.f32 %v2227_v41, 0.0 }
 0x76f   : > { %v2305_v43 = vpack.c.bf16 %v2277_v4, %v2276_v42 }
 0x770   : > { %v2304_v39 = vpack.c.bf16 %v2275_v29, %v2274_v5 }
 0x772   : > { %2455 = vmatmul.mubr.bf16.vlgmr.msra.gmra.mrb[48].mxu1 %v2304_v39 }
 0x773   : > { %2464 = vmatprep.mubr.bf16.mxu1 %v3900_v56 }
 0x778   : > { %v3359_v7 = vpop.f32.mrb[72].mxu0 }
 0x779   : > { %v2248_v44 = vadd.f32 %v3359_v7, %v2124_v58  ;;  %v2239_v8 = vpop.f32.mrb[73].mxu0 }
 0x77a   : > { %v2240_v24 = vadd.f32 %v2239_v8, %v2124_v58  ;;  %v3360_v45 = vpop.f32.mrb[74].mxu0  ;;  %2465 = vmatmul.mubr.bf16.gmra.mrb[52].mxu1 %v2305_v43 }
 0x77b   : > { %v2251_v32 = vadd.f32 %v3360_v45, %v2124_v58  ;;  %v2242_v46 = vpop.f32.mrb[75].mxu0  ;;  %2474 = vmatprep.mubr.bf16.mxu1 %v3900_v56  ;;  %v2280_v49 = vmax.f32 %v2248_v44, 0.0 }
 0x77c   : > { %v2243_v47 = vadd.f32 %v2242_v46, %v2124_v58  ;;  %v2278_v15 = vmax.f32 %v2240_v24, 0.0 }
 0x77d   : > { %v2281_v9 = vmax.f32 %v2251_v32, 0.0 }
 0x77e   : > { %v2279_v59 = vmax.f32 %v2243_v47, 0.0 }
 0x77f   : > { %v2307_v17 = vpack.c.bf16 %v2281_v9, %v2280_v49 }
 0x780   : > { %v2306_v61 = vpack.c.bf16 %v2279_v59, %v2278_v15 }
 0x782   : > { %2475 = vmatmul.mubr.bf16.gmra.mrb[56].mxu1 %v2306_v61 }
 0x783   : > { %2484 = vmatprep.mubr.bf16.mxu1 %v3900_v56 }
 0x788   : > { %v3363_v19 = vpop.f32.mrb[76].mxu0 }
 0x789   : > { %v2264_v51 = vadd.f32 %v3363_v19, %v2124_v58  ;;  %v2255_v57 = vpop.f32.mrb[77].mxu0 }
 0x78a   : > { %v2256_v62 = vadd.f32 %v2255_v57, %v2124_v58  ;;  %v3364_v6 = vpop.f32.mrb[78].mxu0  ;;  %2485 = vmatmul.mubr.bf16.gmra.mrb[60].mxu1 %v2307_v17 }
 0x78b   : > { %v2267_v13 = vadd.f32 %v3364_v6, %v2124_v58  ;;  %v2258_v16 = vpop.f32.mrb[79].mxu0  ;;  %2494 = vmatprep.mubr.bf16.mxu1 %v3900_v56  ;;  %v2284_v12 = vmax.f32 %v2264_v51, 0.0 }
 0x78c   : > { %v2259_v50 = vadd.f32 %v2258_v16, %v2124_v58  ;;  %v2282_v21 = vmax.f32 %v2256_v62, 0.0 }
 0x78d   : > { %v2285_v20 = vmax.f32 %v2267_v13, 0.0 }
 0x78e   : > { %v2283_v22 = vmax.f32 %v2259_v50, 0.0 }
 0x78f   : > { %v2309_v53 = vpack.c.bf16 %v2285_v20, %v2284_v12 }
 0x790   : > { %v2308_v55 = vpack.c.bf16 %v2283_v22, %v2282_v21 }
 0x792   : > { %2495 = vmatmul.mubr.bf16.gmra.mrb[64].mxu1 %v2308_v55 }
 0x793   : > { %2504 = vmatprep.mubr.bf16.mxu1 %v3900_v56 }
 0x79a   : > { %2505 = vmatmul.mubr.bf16.gmra.mrb[68].mxu1 %v2309_v53 }
 0x835   : > { %v2436_v25 = vpop.f32.mrb[80].mxu0 }
 0x836   : > { %v2437_v58 = vadd.f32 %v2436_v25, %v4645_v38  ;;  %v2438_v28 = vpop.f32.mrb[81].mxu0 }
 0x837   : > { %v2439_v27 = vadd.f32 %v2438_v28, %v4648_v23  ;;  %v2440_v34 = vpop.f32.mrb[82].mxu0 }
 0x838   : > { %3610 = vtanh.f32 %v2437_v58  ;;  %v2441_v56 = vadd.f32 %v2440_v34, %v4645_v38  ;;  %v2442_v26 = vpop.f32.mrb[83].mxu0 }
 0x839   : > { %3612 = vtanh.f32 %v2439_v27  ;;  %v2443_v30 = vadd.f32 %v2442_v26, %v4648_v23 }
 0x83a   : > { %3614 = vtanh.f32 %v2441_v56 }
 0x83b   : > { %3616 = vtanh.f32 %v2443_v30 }
 0x83d   : > { %v2446_v11 = vpop.f32.mrb[84].mxu0 }
 0x83e   : > { %v2447_v54 = vadd.f32 %v2446_v11, %v4645_v38  ;;  %v2448_v33 = vpop.f32.mrb[85].mxu0 }
 0x83f   : > { %v2449_v63 = vadd.f32 %v2448_v33, %v4648_v23  ;;  %v2450_v0 = vpop.f32.mrb[86].mxu0 }
 0x840   : > { %3618 = vtanh.f32 %v2447_v54  ;;  %v2451_v14 = vadd.f32 %v2450_v0, %v4645_v38  ;;  %v2452_v35 = vpop.f32.mrb[87].mxu0 }
 0x841   : > { %3620 = vtanh.f32 %v2449_v63  ;;  %v2453_v3 = vadd.f32 %v2452_v35, %v4648_v23 }
 0x842   : > { %v3611_v1 = vpop.eup %3610  ;;  %3622 = vtanh.f32 %v2451_v14 }
 0x843   : > { %v3613_v36 = vpop.eup %3612  ;;  %3624 = vtanh.f32 %v2453_v3 }
 0x844   : > { %v3615_v2 = vpop.eup %3614  ;;  %v2986_v10 = vpack.c.bf16 %v3613_v36, %v3611_v1 }
 0x845   : > { %v3617_v48 = vpop.eup %3616  ;;  %v2456_v60 = vpop.f32.mrb[48].mxu1 }
 0x846   : > { %2643 = vst [vmem:[%s4661_s12] sm:$0xff] %v2986_v10  ;;  %v2987_v18 = vpack.c.bf16 %v3617_v48, %v3615_v2  ;;  %v2457_v37 = vadd.f32 %v2456_v60, %v4645_v38  ;;  %v2458_v52 = vpop.f32.mrb[49].mxu1 }
 0x847   : > { %v2459_v40 = vadd.f32 %v2458_v52, %v4648_v23  ;;  %v2460_v41 = vpop.f32.mrb[50].mxu1 }
 0x848   : > { %2644 = vst [vmem:[%s4661_s12 + $0x8] sm:$0xff] %v2987_v18  ;;  %3626 = vtanh.f32 %v2457_v37  ;;  %v2461_v42 = vadd.f32 %v2460_v41, %v4645_v38  ;;  %v2462_v4 = vpop.f32.mrb[51].mxu1 }
 0x849   : > { %3628 = vtanh.f32 %v2459_v40  ;;  %v2463_v5 = vadd.f32 %v2462_v4, %v4648_v23 }
 0x84a   : > { %v3619_v29 = vpop.eup %3618  ;;  %3630 = vtanh.f32 %v2461_v42 }
 0x84b   : > { %v3621_v43 = vpop.eup %3620  ;;  %3632 = vtanh.f32 %v2463_v5 }
 0x84c   : > { %v3623_v39 = vpop.eup %3622  ;;  %v2988_v7 = vpack.c.bf16 %v3621_v43, %v3619_v29 }
 0x84d   : > { %v3625_v44 = vpop.eup %3624  ;;  %v2466_v8 = vpop.f32.mrb[52].mxu1 }
 0x84e   : > { %2645 = vst [vmem:[%s4661_s12 + $0x10] sm:$0xff] %v2988_v7  ;;  %v2989_v24 = vpack.c.bf16 %v3625_v44, %v3623_v39  ;;  %v2467_v45 = vadd.f32 %v2466_v8, %v4645_v38  ;;  %v2468_v32 = vpop.f32.mrb[53].mxu1 }
 0x84f   : > { %v2469_v46 = vadd.f32 %v2468_v32, %v4648_v23  ;;  %v2470_v47 = vpop.f32.mrb[54].mxu1 }
 0x850   : > { %2646 = vst [vmem:[%s4661_s12 + $0x18] sm:$0xff] %v2989_v24  ;;  %3634 = vtanh.f32 %v2467_v45  ;;  %v2471_v49 = vadd.f32 %v2470_v47, %v4645_v38  ;;  %v2472_v9 = vpop.f32.mrb[55].mxu1 }
 0x851   : > { %3636 = vtanh.f32 %v2469_v46  ;;  %v2473_v15 = vadd.f32 %v2472_v9, %v4648_v23 }
 0x852   : > { %v3627_v59 = vpop.eup %3626  ;;  %3638 = vtanh.f32 %v2471_v49 }
 0x853   : > { %v3629_v17 = vpop.eup %3628  ;;  %3640 = vtanh.f32 %v2473_v15 }
 0x854   : > { %v3631_v61 = vpop.eup %3630  ;;  %v2990_v19 = vpack.c.bf16 %v3629_v17, %v3627_v59 }
 0x855   : > { %v3633_v51 = vpop.eup %3632  ;;  %v2476_v57 = vpop.f32.mrb[56].mxu1 }
 0x856   : > { %2647 = vst [vmem:[%s4661_s12 + $0x20] sm:$0xff] %v2990_v19  ;;  %v2991_v62 = vpack.c.bf16 %v3633_v51, %v3631_v61  ;;  %v2477_v6 = vadd.f32 %v2476_v57, %v4645_v38  ;;  %v2478_v13 = vpop.f32.mrb[57].mxu1 }
 0x857   : > { %v2479_v16 = vadd.f32 %v2478_v13, %v4648_v23  ;;  %v2480_v50 = vpop.f32.mrb[58].mxu1 }
 0x858   : > { %2648 = vst [vmem:[%s4661_s12 + $0x28] sm:$0xff] %v2991_v62  ;;  %3642 = vtanh.f32 %v2477_v6  ;;  %v2481_v12 = vadd.f32 %v2480_v50, %v4645_v38  ;;  %v2482_v20 = vpop.f32.mrb[59].mxu1 }
 0x859   : > { %3644 = vtanh.f32 %v2479_v16  ;;  %v2483_v21 = vadd.f32 %v2482_v20, %v4648_v23 }
 0x85a   : > { %v3635_v22 = vpop.eup %3634  ;;  %3646 = vtanh.f32 %v2481_v12 }
 0x85b   : > { %v3637_v53 = vpop.eup %3636  ;;  %3648 = vtanh.f32 %v2483_v21 }
 0x85c   : > { %v3639_v55 = vpop.eup %3638  ;;  %v2992_v31 = vpack.c.bf16 %v3637_v53, %v3635_v22 }
 0x85d   : > { %v3641_v25 = vpop.eup %3640  ;;  %v2486_v58 = vpop.f32.mrb[60].mxu1 }
 0x85e   : > { %2649 = vst [vmem:[%s4661_s12 + $0x30] sm:$0xff] %v2992_v31  ;;  %v2993_v28 = vpack.c.bf16 %v3641_v25, %v3639_v55  ;;  %v2487_v27 = vadd.f32 %v2486_v58, %v4645_v38  ;;  %v2488_v34 = vpop.f32.mrb[61].mxu1 }
 0x85f   : > { %v2489_v56 = vadd.f32 %v2488_v34, %v4648_v23  ;;  %v2490_v26 = vpop.f32.mrb[62].mxu1 }
 0x860   : > { %2650 = vst [vmem:[%s4661_s12 + $0x38] sm:$0xff] %v2993_v28  ;;  %3650 = vtanh.f32 %v2487_v27  ;;  %v2491_v30 = vadd.f32 %v2490_v26, %v4645_v38  ;;  %v2492_v11 = vpop.f32.mrb[63].mxu1 }
 0x861   : > { %3652 = vtanh.f32 %v2489_v56  ;;  %v2493_v54 = vadd.f32 %v2492_v11, %v4648_v23 }
 0x862   : > { %v3643_v33 = vpop.eup %3642  ;;  %3654 = vtanh.f32 %v2491_v30 }
 0x863   : > { %v3645_v63 = vpop.eup %3644  ;;  %3656 = vtanh.f32 %v2493_v54 }
 0x864   : > { %v3647_v0 = vpop.eup %3646  ;;  %v2994_v14 = vpack.c.bf16 %v3645_v63, %v3643_v33 }
 0x865   : > { %v3649_v35 = vpop.eup %3648  ;;  %v2496_v3 = vpop.f32.mrb[64].mxu1 }
 0x866   : > { %2651 = vst [vmem:[%s4661_s12 + $0x40] sm:$0xff] %v2994_v14  ;;  %v2995_v1 = vpack.c.bf16 %v3649_v35, %v3647_v0  ;;  %v2497_v36 = vadd.f32 %v2496_v3, %v4645_v38  ;;  %v2498_v2 = vpop.f32.mrb[65].mxu1 }
 0x867   : > { %v2499_v10 = vadd.f32 %v2498_v2, %v4648_v23  ;;  %v2500_v48 = vpop.f32.mrb[66].mxu1 }
 0x868   : > { %2652 = vst [vmem:[%s4661_s12 + $0x48] sm:$0xff] %v2995_v1  ;;  %3658 = vtanh.f32 %v2497_v36  ;;  %v2501_v60 = vadd.f32 %v2500_v48, %v4645_v38  ;;  %v2502_v18 = vpop.f32.mrb[67].mxu1 }
 0x869   : > { %3660 = vtanh.f32 %v2499_v10  ;;  %v2503_v37 = vadd.f32 %v2502_v18, %v4648_v23 }
 0x86a   : > { %v3651_v52 = vpop.eup %3650  ;;  %3662 = vtanh.f32 %v2501_v60 }
 0x86b   : > { %v3653_v40 = vpop.eup %3652  ;;  %3664 = vtanh.f32 %v2503_v37 }
 0x86c   : > { %v3655_v41 = vpop.eup %3654  ;;  %v2996_v42 = vpack.c.bf16 %v3653_v40, %v3651_v52 }
 0x86d   : > { %v3657_v4 = vpop.eup %3656  ;;  %v2506_v5 = vpop.f32.mrb[68].mxu1 }
 0x86e   : > { %2653 = vst [vmem:[%s4661_s12 + $0x50] sm:$0xff] %v2996_v42  ;;  %v2997_v29 = vpack.c.bf16 %v3657_v4, %v3655_v41  ;;  %v2507_v43 = vadd.f32 %v2506_v5, %v4645_v38  ;;  %v2508_v39 = vpop.f32.mrb[69].mxu1 }
 0x86f   : > { %v2509_v7 = vadd.f32 %v2508_v39, %v4648_v23  ;;  %v2510_v44 = vpop.f32.mrb[70].mxu1 }
 0x870   : > { %2654 = vst [vmem:[%s4661_s12 + $0x58] sm:$0xff] %v2997_v29  ;;  %3666 = vtanh.f32 %v2507_v43  ;;  %v2511_v8 = vadd.f32 %v2510_v44, %v4645_v38  ;;  %v2512_v24 = vpop.f32.mrb[71].mxu1 }
 0x871   : > { %3668 = vtanh.f32 %v2509_v7  ;;  %v2513_v45 = vadd.f32 %v2512_v24, %v4648_v23 }
 0x872   : > { %v3659_v32 = vpop.eup %3658  ;;  %3670 = vtanh.f32 %v2511_v8 }
 0x873   : > { %v3661_v46 = vpop.eup %3660  ;;  %3672 = vtanh.f32 %v2513_v45 }
 0x874   : > { %v3663_v47 = vpop.eup %3662  ;;  %v2998_v49 = vpack.c.bf16 %v3661_v46, %v3659_v32 }
 0x875   : > { %v3665_v9 = vpop.eup %3664 }
 0x876   : > { %2655 = vst [vmem:[%s4661_s12 + $0x60] sm:$0xff] %v2998_v49  ;;  %v2999_v15 = vpack.c.bf16 %v3665_v9, %v3663_v47 }
 0x878   : > { %2656 = vst [vmem:[%s4661_s12 + $0x68] sm:$0xff] %v2999_v15 }
 0x87a   : > { %v3667_v38 = vpop.eup %3666 }
 0x87b   : > { %v3669_v59 = vpop.eup %3668 }
 0x87c   : > { %v3671_v17 = vpop.eup %3670  ;;  %v3000_v23 = vpack.c.bf16 %v3669_v59, %v3667_v38 }
 0x87d   : > { %v3673_v61 = vpop.eup %3672 }
 0x87e   : > { %2657 = vst [vmem:[%s4661_s12 + $0x70] sm:$0xff] %v3000_v23  ;;  %v3001_v19 = vpack.c.bf16 %v3673_v61, %v3671_v17 }
 0x880   : > { %2658 = vst [vmem:[%s4661_s12 + $0x78] sm:$0xff] %v3001_v19 }
 0x881   : > { %3827 = shalt.err (!%p3824_p6)
}
 0x882   : > { %s3828_s14 = scalar_lea.hbm %s4706_s25, 2048  ;;  %s3832_s21 = scalar_lea.hbm %s4810_s22, 4096 }
 0x883   : > { %p3829_p0 = scmp.ne.s32.totalorder %s4706_s25, %s3828_s14  ;;  %p3833_p13 = scmp.lt.u32.totalorder %s4706_s25, %s4810_s22 }
 0x884   : > { %p3834_p12 = scmp.lt.u32.totalorder %s3832_s21, %s3828_s14  ;;  %p3836_p2 = scmp.lt.u32.totalorder %s3828_s14, %s4706_s25 }
 0x885   : > { %p3830_p9 = pnand %p3829_p0, %p4811_p3 }
 0x886   : > { %p3835_p1 = por %p3834_p12, %p3833_p13 }
 0x887   : > { %p3831_p10 = pneg %p3830_p9 }
 0x888   : > { %p3837_p4 = por %p3836_p2, %p3835_p1 }
 0x88a   : > { %p3838_p7 = pnand %p3837_p4, %p3831_p10 }
 0x88c   : > { %3841 = shalt.err (!%p3838_p7)
}
 0x88d   : > { %s3902_s18 = smov 128   ;;  %s3903_s16 = smov 8  }
 0x88e   : > { %3417 = dma.vmem_to_hbm [thread:$0]  (%p4811_p3), %s4708_s17, 2048, %s4706_s25, %s4714_s29, %s3902_s18, %s3902_s18, %s3903_s16  }
 0x88f PF: > { %s4812_s15 = sld [smem:[#allocation18_spill]]  ;;  %s4813_s30 = sld [smem:[#allocation16_spill]] }
 0x890   : > { %s4814_s19 = sld [smem:[#allocation22_spill]] }
 0x895   : > { %p3449_p8 = scmp.ge.s32.totalorder %s4812_s15, 2  ;;  %s2715_s24 = sand.u32 1, %s4813_s30  }
 0x896   : > { %p4815_p11 = scmp.ne.s32.totalorder %s4814_s19, 0  ;;  %s2716_s7 = scalar_lea.sflag [#allocation4], %s2715_s24 }
 0x898   : > { %p3436_p5 = pnand %p3449_p8, %p4815_p11 }
 0x89a   : > { %3871 = dma.done.wait (!%p3436_p5), %s2716_s7, 2048  }
 0x89b   : > { %3873 = vsyncadd (!%p3436_p5), %s2716_s7, 4294965248  ;;  %s4816_s28 = sld [smem:[#allocation19_spill]]  ;;  %s4817_s14 = sld [smem:[#allocation17_spill]] }
 0x89c   : > { %s4818_s27 = sld [smem:[#allocation20_spill]]  ;;  %s4819_s25 = smov %s3880_s26 }
 0x8a1   : > { %p27_p6 = scmp.ge.s32.totalorder %s4816_s28, 4   ;;  %s4820_s26 = smov %s4817_s14 }
 0x8a3   :  { %29 = sbr.rel (!%p27_p6) target bundleno = 9 (0x9), region = 141 }
 0x8aa   :  { %2729 = vsyncpa [#allocation3], 1 }
 0x8ab   :  { %2731 = vsyncpa [#allocation3 + $0x1], 1 }
 0x8ac   :  { %2732 = vsyncpa [#allocation6], 1 }
 0x8ad   :  { %2733 = vsyncpa [#allocation9], 1 }
 0x8ae   :  { %2734 = vsyncpa [#allocation4], 1 }
 0x8af   :  { %2736 = vsyncpa [#allocation4 + $0x1], 1 }

</bundles_post_ra>
